<compile_context>
chip_gen: v7x
topology: tpu7x:2x2x1
jax: 0.10.0
libtpu: 0.0.40
codegen_flags: <defaults>
</compile_context>

<pallas_src>
import jax
import jax.numpy as jnp
from jax.experimental import pallas as pl
from jax.experimental.pallas import tpu as pltpu


def _round_up(n, m):
    return ((n + m - 1) // m) * m


def _generator_kernel(z_ref, c_ref, w1z_ref, w1c_ref, b1_ref, w2_ref, b2_ref, out_ref):
    # z_ref  : (TB, z_dim)   bf16 (or f32)
    # c_ref  : (TB, n_cls)   bf16 (or f32)
    # w1z_ref: (z_dim, hP)   bf16 (or f32)
    # w1c_ref: (n_cls, hP)   bf16 (or f32)
    # b1_ref : (1, hP)       f32
    # w2_ref : (hP, xP)      bf16 (or f32)
    # b2_ref : (1, xP)       f32
    # out_ref: (TB, xP)      f32
    #
    # First layer: the torch.cat([z, c]) @ W1^T is expressed as two small
    # matmuls against the pre-split (and pre-transposed) weight halves.
    h = (
        jnp.dot(z_ref[...], w1z_ref[...], preferred_element_type=jnp.float32)
        + jnp.dot(c_ref[...], w1c_ref[...], preferred_element_type=jnp.float32)
        + b1_ref[...]
    )
    h = jnp.maximum(h, 0.0)                                    # ReLU in f32 (VPU)

    # Second layer: bf16 operands on the MXU, f32 accumulation, f32 epilogue.
    o = (
        jnp.dot(h.astype(w2_ref.dtype), w2_ref[...], preferred_element_type=jnp.float32)
        + b2_ref[...]
    )
    out_ref[...] = jax.nn.sigmoid(o)                           # sigmoid in f32 (EUP)


def generator_forward(z, c, w1, b1, w2, b2, *, batch_tile=256, use_bf16=True):
    """CGAN generator forward.

    z : (B, z_dim) latent, c : (B, n_cls) conditioning (e.g. one-hot labels).
    w1: (z_dim + n_cls, h_dim)  -- PyTorch fc1.weight already transposed.
    b1: (h_dim,)
    w2: (h_dim, x_dim)          -- PyTorch fc2.weight already transposed.
    b2: (x_dim,)
    Returns (B, x_dim) float32.
    """
    B, z_dim = z.shape
    n_cls = c.shape[1]
    h_dim = w1.shape[1]
    x_dim = w2.shape[1]
    assert w1.shape[0] == z_dim + n_cls, "w1 must be (z_dim + n_cls, h_dim)"

    mm_dtype = jnp.bfloat16 if use_bf16 else jnp.float32

    # Lane-dense feature dims (multiples of 128) -> unmasked vector stores.
    hP = _round_up(h_dim, 128)
    xP = _round_up(x_dim, 128)

    # Split W1 so the concat([z, c]) never materializes; zero-pad feature dims
    # (padded hidden columns produce relu(0)=0 and padded W2 rows are 0, so
    # results in the valid region are unchanged).
    w1f = w1.astype(jnp.float32)
    w1z = jnp.zeros((z_dim, hP), mm_dtype).at[:, :h_dim].set(w1f[:z_dim].astype(mm_dtype))
    w1c = jnp.zeros((n_cls, hP), mm_dtype).at[:, :h_dim].set(w1f[z_dim:].astype(mm_dtype))
    b1p = jnp.zeros((1, hP), jnp.float32).at[0, :h_dim].set(b1.astype(jnp.float32))
    w2p = jnp.zeros((hP, xP), mm_dtype).at[:h_dim, :x_dim].set(w2.astype(mm_dtype))
    b2p = jnp.zeros((1, xP), jnp.float32).at[0, :x_dim].set(b2.astype(jnp.float32))

    # Batch tiling: sublane-aligned tile, batch padded to a whole number of tiles.
    TB = max(8, min(_round_up(batch_tile, 8), _round_up(B, 8)))
    BP = _round_up(B, TB)
    zp = jnp.zeros((BP, z_dim), mm_dtype).at[:B].set(z.astype(mm_dtype))
    cp = jnp.zeros((BP, n_cls), mm_dtype).at[:B].set(c.astype(mm_dtype))

    grid = (BP // TB,)

    out = pl.pallas_call(
        _generator_kernel,
        out_shape=jax.ShapeDtypeStruct((BP, xP), jnp.float32),
        grid=grid,
        in_specs=[
            pl.BlockSpec((TB, z_dim), lambda i: (i, 0)),   # batch-tiled
            pl.BlockSpec((TB, n_cls), lambda i: (i, 0)),   # batch-tiled
            pl.BlockSpec((z_dim, hP), lambda i: (0, 0)),   # weights resident
            pl.BlockSpec((n_cls, hP), lambda i: (0, 0)),   # across all steps
            pl.BlockSpec((1, hP), lambda i: (0, 0)),
            pl.BlockSpec((hP, xP), lambda i: (0, 0)),
            pl.BlockSpec((1, xP), lambda i: (0, 0)),
        ],
        out_specs=pl.BlockSpec((TB, xP), lambda i: (i, 0)),
        compiler_params=pltpu.CompilerParams(
            # Batch tiles are independent -> shard across both TCs on v7x.
            dimension_semantics=("parallel",),
            # Explicit budget: tiny usage here, but stays well under the
            # v7x 64 MiB physical VMEM even with double-buffering.
            vmem_limit_bytes=32 * 1024 * 1024,
        ),
    )(zp, cp, w1z, w1c, b1p, w2p, b2p)

    # Slice off batch and lane padding.
    return out[:B, :x_dim]


def init_generator_params(key, z_dim, h_dim, x_dim, n_cls=10):
    """Xavier-normal weights, zero biases (matches xavier_init in the module).
    Weights are stored already transposed: (in_features, out_features)."""
    k1, k2 = jax.random.split(key)
    in1 = z_dim + n_cls
    std1 = (2.0 / (in1 + h_dim)) ** 0.5
    std2 = (2.0 / (h_dim + x_dim)) ** 0.5
    w1 = std1 * jax.random.normal(k1, (in1, h_dim), dtype=jnp.float32)
    b1 = jnp.zeros((h_dim,), dtype=jnp.float32)
    w2 = std2 * jax.random.normal(k2, (h_dim, x_dim), dtype=jnp.float32)
    b2 = jnp.zeros((x_dim,), dtype=jnp.float32)
    return w1, b1, w2, b2


if __name__ == "__main__":
    # MNIST-style CGAN shapes (h_dim = 128 as in the module), modest batch so
    # the batch-tiled grid actually has >1 step (TB=128 -> 2 grid steps).
    B, z_dim, h_dim, x_dim, n_cls = 256, 100, 128, 784, 10

    key = jax.random.PRNGKey(0)
    kp, kz, kc = jax.random.split(key, 3)

    w1, b1, w2, b2 = init_generator_params(kp, z_dim, h_dim, x_dim, n_cls)

    z = jax.random.normal(kz, (B, z_dim), dtype=jnp.float32)
    labels = jax.random.randint(kc, (B,), 0, n_cls)
    c = jax.nn.one_hot(labels, n_cls, dtype=jnp.float32)       # (B, 10) conditioning

    out = generator_forward(z, c, w1, b1, w2, b2, batch_tile=128, use_bf16=True)
    out = jax.block_until_ready(out)

    # Reference in plain f32 JAX (same math as the PyTorch module).
    x = jnp.concatenate([z, c], axis=1)
    ref = jax.nn.sigmoid(jnp.maximum(x @ w1 + b1, 0.0) @ w2 + b2)

    assert out.shape == (B, x_dim)
    assert bool(jnp.all(jnp.isfinite(out)))
    # bf16 MXU operands (f32 accumulation) -> allow small numeric drift.
    assert bool(jnp.allclose(out, ref, atol=2e-2, rtol=0.0)), float(
        jnp.max(jnp.abs(out - ref))
    )

    print("KERNEL_OK")
</pallas_src>

<mosaic_0001>
module attributes {stable_mosaic.version = 11 : i64} {
  func.func @_generator_kernel(%arg0: i32, %arg1: memref<128x100xbf16, #tpu.memory_space<vmem>>, %arg2: memref<128x10xbf16, #tpu.memory_space<vmem>>, %arg3: memref<100x128xbf16, #tpu.memory_space<vmem>>, %arg4: memref<10x128xbf16, #tpu.memory_space<vmem>>, %arg5: memref<1x128xf32, #tpu.memory_space<vmem>>, %arg6: memref<128x896xbf16, #tpu.memory_space<vmem>>, %arg7: memref<1x896xf32, #tpu.memory_space<vmem>>, %arg8: memref<128x896xf32, #tpu.memory_space<vmem>>) attributes {dimension_semantics = [#tpu.dimension_semantics<parallel>], iteration_bounds = array<i64: 2>, scalar_prefetch = 0 : i64, scratch_operands = 0 : i64, tpu.core_type = #tpu.core_type<tc>, window_params = [{transform_indices = @transform_0, window_bounds = array<i64: 128, 100>}, {transform_indices = @transform_1, window_bounds = array<i64: 128, 10>}, {pipeline_mode = #tpu.pipeline_mode<synchronous>, transform_indices = @transform_2, window_bounds = array<i64: 100, 128>}, {pipeline_mode = #tpu.pipeline_mode<synchronous>, transform_indices = @transform_3, window_bounds = array<i64: 10, 128>}, {pipeline_mode = #tpu.pipeline_mode<synchronous>, transform_indices = @transform_4, window_bounds = array<i64: 1, 128>}, {pipeline_mode = #tpu.pipeline_mode<synchronous>, transform_indices = @transform_5, window_bounds = array<i64: 128, 896>}, {pipeline_mode = #tpu.pipeline_mode<synchronous>, transform_indices = @transform_6, window_bounds = array<i64: 1, 896>}, {transform_indices = @transform_7, window_bounds = array<i64: 128, 896>}]} {
    %c0 = arith.constant 0 : index
    %c0_0 = arith.constant 0 : index
    %0 = vector.load %arg1[%c0, %c0_0] : memref<128x100xbf16, #tpu.memory_space<vmem>>, vector<128x100xbf16>
    %c0_1 = arith.constant 0 : index
    %c0_2 = arith.constant 0 : index
    %1 = vector.load %arg3[%c0_1, %c0_2] : memref<100x128xbf16, #tpu.memory_space<vmem>>, vector<100x128xbf16>
    %cst = arith.constant dense<0.000000e+00> : vector<128x128xf32>
    %2 = tpu.matmul %0, %1, %cst {dimension_numbers = #tpu.dot_dimension_numbers<[1], [0], [0], [1], [0, 0, 1, 1], [], []>} : vector<128x100xbf16>, vector<100x128xbf16>, vector<128x128xf32> -> vector<128x128xf32>
    %c0_3 = arith.constant 0 : index
    %c0_4 = arith.constant 0 : index
    %3 = vector.load %arg2[%c0_3, %c0_4] : memref<128x10xbf16, #tpu.memory_space<vmem>>, vector<128x10xbf16>
    %c0_5 = arith.constant 0 : index
    %c0_6 = arith.constant 0 : index
    %4 = vector.load %arg4[%c0_5, %c0_6] : memref<10x128xbf16, #tpu.memory_space<vmem>>, vector<10x128xbf16>
    %cst_7 = arith.constant dense<0.000000e+00> : vector<128x128xf32>
    %5 = tpu.matmul %3, %4, %cst_7 {dimension_numbers = #tpu.dot_dimension_numbers<[1], [0], [0], [1], [0, 0, 1, 1], [], []>} : vector<128x10xbf16>, vector<10x128xbf16>, vector<128x128xf32> -> vector<128x128xf32>
    %6 = arith.addf %2, %5 : vector<128x128xf32>
    %c0_8 = arith.constant 0 : index
    %c0_9 = arith.constant 0 : index
    %7 = vector.load %arg5[%c0_8, %c0_9] : memref<1x128xf32, #tpu.memory_space<vmem>>, vector<1x128xf32>
    %8 = vector.broadcast %7 : vector<1x128xf32> to vector<128x128xf32>
    %9 = arith.addf %6, %8 : vector<128x128xf32>
    %cst_10 = arith.constant 0.000000e+00 : f32
    %10 = vector.broadcast %cst_10 : f32 to vector<128x128xf32>
    %11 = arith.maximumf %9, %10 : vector<128x128xf32>
    %12 = arith.truncf %11 : vector<128x128xf32> to vector<128x128xbf16>
    %c0_11 = arith.constant 0 : index
    %c0_12 = arith.constant 0 : index
    %13 = vector.load %arg6[%c0_11, %c0_12] : memref<128x896xbf16, #tpu.memory_space<vmem>>, vector<128x896xbf16>
    %cst_13 = arith.constant dense<0.000000e+00> : vector<128x896xf32>
    %14 = tpu.matmul %12, %13, %cst_13 {dimension_numbers = #tpu.dot_dimension_numbers<[1], [0], [0], [1], [0, 0, 1, 1], [], []>} : vector<128x128xbf16>, vector<128x896xbf16>, vector<128x896xf32> -> vector<128x896xf32>
    %c0_14 = arith.constant 0 : index
    %c0_15 = arith.constant 0 : index
    %15 = vector.load %arg7[%c0_14, %c0_15] : memref<1x896xf32, #tpu.memory_space<vmem>>, vector<1x896xf32>
    %16 = vector.broadcast %15 : vector<1x896xf32> to vector<128x896xf32>
    %17 = arith.addf %14, %16 : vector<128x896xf32>
    %18 = arith.negf %17 : vector<128x896xf32>
    %19 = math.exp %18 : vector<128x896xf32>
    %cst_16 = arith.constant 1.000000e+00 : f32
    %20 = vector.broadcast %cst_16 : f32 to vector<128x896xf32>
    %21 = arith.addf %20, %19 : vector<128x896xf32>
    %22 = arith.divf %20, %21 : vector<128x896xf32>
    %c0_17 = arith.constant 0 : index
    %c0_18 = arith.constant 0 : index
    %23 = vector.load %arg8[%c0_17, %c0_18] : memref<128x896xf32, #tpu.memory_space<vmem>>, vector<128x896xf32>
    tpu.vector_store %arg8[%c0_17, %c0_18], %22 {strides = array<i32>} : memref<128x896xf32, #tpu.memory_space<vmem>>, vector<128x896xf32>,
    return
  }
  func.func @transform_0(%arg0: i32) -> (i32, i32) {
    %c0_i32 = arith.constant 0 : i32
    %c0_i32_0 = arith.constant 0 : i32
    return %arg0, %c0_i32 : i32, i32
  }
  func.func @transform_1(%arg0: i32) -> (i32, i32) {
    %c0_i32 = arith.constant 0 : i32
    %c0_i32_0 = arith.constant 0 : i32
    return %arg0, %c0_i32 : i32, i32
  }
  func.func @transform_2(%arg0: i32) -> (i32, i32) {
    %c0_i32 = arith.constant 0 : i32
    %c0_i32_0 = arith.constant 0 : i32
    %c0_i32_1 = arith.constant 0 : i32
    return %c0_i32, %c0_i32_0 : i32, i32
  }
  func.func @transform_3(%arg0: i32) -> (i32, i32) {
    %c0_i32 = arith.constant 0 : i32
    %c0_i32_0 = arith.constant 0 : i32
    %c0_i32_1 = arith.constant 0 : i32
    return %c0_i32, %c0_i32_0 : i32, i32
  }
  func.func @transform_4(%arg0: i32) -> (i32, i32) {
    %c0_i32 = arith.constant 0 : i32
    %c0_i32_0 = arith.constant 0 : i32
    %c0_i32_1 = arith.constant 0 : i32
    return %c0_i32, %c0_i32_0 : i32, i32
  }
  func.func @transform_5(%arg0: i32) -> (i32, i32) {
    %c0_i32 = arith.constant 0 : i32
    %c0_i32_0 = arith.constant 0 : i32
    %c0_i32_1 = arith.constant 0 : i32
    return %c0_i32, %c0_i32_0 : i32, i32
  }
  func.func @transform_6(%arg0: i32) -> (i32, i32) {
    %c0_i32 = arith.constant 0 : i32
    %c0_i32_0 = arith.constant 0 : i32
    %c0_i32_1 = arith.constant 0 : i32
    return %c0_i32, %c0_i32_0 : i32, i32
  }
  func.func @transform_7(%arg0: i32) -> (i32, i32) {
    %c0_i32 = arith.constant 0 : i32
    %c0_i32_0 = arith.constant 0 : i32
    return %arg0, %c0_i32 : i32, i32
  }
}

</mosaic_0001>

<bundles_post_ra>
// kernel: tpu_custom_call.1
= control target key start
LH: loop header
LB: loop body
LE: loop exit
PB: predicated region body
PF: predicated region fallthrough
CT: control target
= control target key end

     0   :  { %12 = vsyncpa [#allocation3], 0  ;;  %s4438_s0 = inlined_call_operand.vmem [shape: bf16[256,100], index: 0, kind: input, shape index: {}]   ;;  %s4439_s1 = inlined_call_operand.vmem [shape: bf16[256,10], index: 1, kind: input, shape index: {}]   ;;  %s4440_s2 = inlined_call_operand.vmem [shape: bf16[100,128], index: 2, kind: input, shape index: {}]   ;;  %s4441_s3 = inlined_call_operand.vmem [shape: bf16[10,128], index: 3, kind: input, shape index: {}]   ;;  %s4442_s4 = inlined_call_operand.vmem [shape: f32[1,128], index: 4, kind: input, shape index: {}]   ;;  %s4443_s5 = inlined_call_operand.hbm [shape: bf16[128,896], index: 5, kind: input, shape index: {}]   ;;  %s4444_s6 = inlined_call_operand.vmem [shape: f32[1,896], index: 6, kind: input, shape index: {}]   ;;  %s4445_s7 = inlined_call_operand.hbm [shape: f32[256,896], index: 7, kind: output, shape index: {}]  }
   0x1   :  { %13 = vsyncpa [#allocation4], 0 }
   0x2   :  { %15 = vsyncpa [#allocation4 + $0x1], 0  ;;  %s3613_s24 = smov 0   ;;  %s3615_s25 = smov 0  }
   0x3   :  { %s3617_s26 = smov 0   ;;  %s3619_s27 = smov 0  }
   0x4 LB: > { %s3634_s28 = sadd.s32 4294967295, %s3564_s27   ;;  %s2498_s29 = sadd.s32 4294967294, %s3564_s27   ;;  %s3564_s27 = sphi %s3619_s27, %s4465_s27   ;;  %s3560_s26 = sphi %s3617_s26, %s4464_s26   ;;  %s3556_s25 = sphi %s3615_s25, %s4463_s25   ;;  %s3552_s24 = sphi %s3613_s24, %s4462_s24  }
   0x5   : > { %s3638_s30 = sadd.s32 1, %s3564_s27   ;;  %s185_s8 = sadd.s32 1, %s3560_s26 }
   0x6   : > { %s182_s9 = ssub.s32 %s3564_s27, %s3638_s30  ;;  %p195_p0 = scmp.ne.s32.totalorder %s3560_s26, %s3556_s25 }
   0x7   : > { %p183_p1 = scmp.eq.s32.totalorder %s182_s9, 0  ;;  %p196_p2 = scmp.eq.s32.totalorder %s3634_s28, 1 }
   0x8   : > { %p201_p3 = scmp.ne.s32.totalorder %s3556_s25, %s3552_s24  ;;  %p202_p4 = scmp.eq.s32.totalorder %s2498_s29, 1 }
   0x9   : > { %s3649_s10 = scalar_select %p183_p1, %s3560_s26, %s185_s8  }
   0xa   : > { %p3651_p5 = por %p196_p2, %p195_p0  ;;  %p3655_p6 = por %p202_p4, %p201_p3 }
   0xb   : > { %p2499_p7 = scmp.ge.s32.totalorder %s3564_s27, 1  ;;  %p209_p8 = scmp.lt.s32.totalorder %s3564_s27, 3 }
   0xc   : > { %s4449_s11 = scalar_select %p3651_p5, 1, 0 }
   0xd   : > { %s4450_s12 = scalar_select %p3655_p6, 1, 0 }
   0xe   : > { %p4446_p9 = scmp.eq.s32.totalorder %s3634_s28, 0  ;;  %p3662_p10 = pnand %p2499_p7, %p209_p8 }
   0xf   : > { %s3566_s14 = smov [#allocation2]   ;;  %s3470_s19 = scalar_lea.hbm %s4443_s5, 7168 }
  0x10   : > { %s4451_s13 = scalar_select %p3662_p10, 1, 0 }
  0x11   : > { %s230_s15 = sshll.u32 %s3566_s14, 4  ;;  %p2868_p11 = pneg %p3662_p10  ;;  %s231_s15 = int_to_ptr.vmem [resolvable:$true] %s230_s15 }
  0x12   : > { %p3471_p13 = scmp.ne.s32.totalorder %s4443_s5, %s3470_s19  ;;  %p3477_p3 = scmp.lt.u32.totalorder %s3470_s19, %s4443_s5 }
  0x13   : > { %p3670_p12 = pnand %p4446_p9, %p2868_p11 }
  0x15   : > { %p3472_p0 = pneg %p3670_p12 }
  0x17   : > { %p3473_p1 = pnand %p3472_p0, %p3471_p13 }
  0x19   : > { %p3474_p2 = pneg %p3473_p1 }
  0x1b   : > { %p3479_p4 = pnand %p3477_p3, %p3474_p2 }
  0x1d   : > { %3482 = shalt.err (!%p3479_p4)
}
  0x1e   : > { %s3483_s29 = scalar_lea.vmem %s231_s15, 7168  ;;  %p3491_p9 = scmp.lt.s32.totalorder %s231_s15, %s231_s15 }
  0x1f   : > { %p3484_p7 = scmp.ne.s32.totalorder %s231_s15, %s3483_s29  ;;  %p3492_p6 = scmp.lt.s32.totalorder %s3483_s29, %s3483_s29 }
  0x21   : > { %p3486_p8 = pnand %p3484_p7, %p3472_p0  ;;  %p3493_p5 = por %p3492_p6, %p3491_p9 }
  0x23   : > { %p3487_p11 = pneg %p3486_p8 }
  0x25   : > { %p3494_p10 = pnand %p3493_p5, %p3487_p11 }
  0x27   : > { %3497 = shalt.err (!%p3494_p10)
}
  0x28   : > { %s3567_s8 = smov 448   ;;  %s3568_s9 = smov 28  }
  0x29   : > { %2871 = dma.hbm_to_vmem [thread:$0]  (!%p3670_p12), %s4443_s5, 7168, %s231_s15, [#allocation3], %s3567_s8, %s3567_s8, %s3568_s9  }
  0x2a   : > { %p4453_p13 = scmp.ne.s32.totalorder %s4451_s13, 0 }
  0x2c   : > { %267 = sbr.rel (%p4453_p13) target bundleno = 788 (0x314), region = 48 }
  0x33   : > { %p4454_p1 = scmp.eq.s32.totalorder %s3634_s28, 0 }
  0x35   : > { %3543 = dma.done.wait (%p4454_p1), [#allocation3], 7168   ;;  %p4455_p0 = pmov %p4454_p1 }
  0x36   : > { %s2504_s18 = sshll.u32 %s3634_s28, 4  ;;  %vm435_vm0 = vcmask 1044480   ;;  %vm410_vm1 = vcmask 80896   ;;  %v2917_v0 = vld [vmem:[%s4441_s3] sm:$0x1f]   ;;  %v2921_v5 = vld [vmem:[%s4440_s2 + $0x8] sm:$0xff]  }
  0x37   : > { %3545 = vsyncadd (%p4455_p0), [#allocation3], 4294960128  ;;  %p305_p5 = scmp.lt.s32.totalorder %s2504_s18, 31  ;;  %2858 = vmatprep.subr.msk.bf16.mxu0 %vm435_vm0, %v2917_v0  ;;  %v437_v2 = vsel %vm435_vm0, %v2917_v0, 0  ;;  %v2920_v4 = vld [vmem:[%s4440_s2] sm:$0xff]   ;;  %v2924_v7 = vld [vmem:[%s4440_s2 + $0x10] sm:$0xff]  }
  0x38   : > { %2763 = vmatpush3.bf16.msra.mxu0 %v437_v2  ;;  %v2925_v10 = vld [vmem:[%s4440_s2 + $0x18] sm:$0xff]   ;;  %v2928_v11 = vld [vmem:[%s4440_s2 + $0x20] sm:$0xff]   ;;  %v2930_v14 = vld [vmem:[%s4440_s2 + $0x28] sm:$0xff]   ;;  %vm640_vm2 = vcmask 1041408   ;;  %vm615_vm3 = vcmask 818176   ;;  %v3569_v58 = vmov 0  }
  0x39   : > { %s4467_s18 = smov (!%p305_p5, %s2504_s18), 31  ;;  %2780 = vmatprep.subr.bf16.mxu0 %v2920_v4  ;;  %v2932_v15 = vld [vmem:[%s4440_s2 + $0x30] ss:$0 sps:$4 sm:$0x33]   ;;  %v2941_v16 = vld [vmem:[#allocation2 + $0x4] ss:$28 sps:$4 sm:$0xff]   ;;  %1209 = vmatprep.mubr.bf16.mxu1 %v3569_v58 }
  0x3a   : > { %s2505_s19 = sshll.u32 %s4467_s18, 2  ;;  %1177 = vmatprep.subr.bf16.mxu1 %v2941_v16  ;;  %v2946_v19 = vld [vmem:[#allocation2] ss:$28 sps:$4 sm:$0xff]   ;;  %v642_v21 = vsel %vm640_vm2, %v2932_v15, 0  ;;  %v2945_v22 = vld [vmem:[#allocation2 + $0xc] ss:$28 sps:$4 sm:$0xff]  }
  0x3b   : > { %s3700_s21 = scalar_lea.vmem %s4439_s1, %s2505_s19  ;;  %s3729_s13 = scalar_lea.vmem %s4438_s0, %s2505_s19  ;;  %v2947_v20 = vld [vmem:[#allocation2 + $0x3c] ss:$28 sps:$4 sm:$0xff]   ;;  %1178 = vmatpush1.bf16.msra.mxu1 %v2946_v19  ;;  %v2953_v24 = vld [vmem:[#allocation2 + $0x74] ss:$28 sps:$4 sm:$0xff]   ;;  %v2959_v27 = vld [vmem:[#allocation2 + $0xac] ss:$28 sps:$4 sm:$0xff]  }
  0x3c   : > { %v2918_v1 = vld [vmem:[%s3700_s21] sm:$0xff]   ;;  %v2919_v3 = vld [vmem:[%s3700_s21 + $0x8] sm:$0xff]   ;;  %v2922_v6 = vld [vmem:[%s3700_s21 + $0x10] sm:$0xff]   ;;  %1179 = vmatprep.subr.bf16.mxu1 %v2947_v20  ;;  %s301_s18 = sand.u32 1, %s3556_s25   ;;  %s2861_s22 = smul.u32 14336, %s3634_s28 }
  0x3d   : > { %2764 = vmatprep.mubr.msk.bf16.mxu0 %vm410_vm1, %v2918_v1  ;;  %v2923_v8 = vld [vmem:[%s3700_s21 + $0x18] sm:$0xff]   ;;  %v2926_v9 = vld [vmem:[%s3700_s21 + $0x20] sm:$0xff]   ;;  %v2927_v12 = vld [vmem:[%s3700_s21 + $0x28] sm:$0xff]   ;;  %s3889_s16 = smul.u32 896, %s301_s18  ;;  %s4397_s28 = scalar_lea.sflag [#allocation4], %s301_s18 }
  0x3e   : > { %2765 = vmatmul.mubr.msk.bf16.vlgmr.msra.gmra.mrb[0].mxu0 %vm410_vm1, %v2919_v3  ;;  %v2929_v13 = vld [vmem:[%s3700_s21 + $0x30] sm:$0xff]   ;;  %v2931_v17 = vld [vmem:[%s3700_s21 + $0x38] sm:$0xff]   ;;  %v2933_v18 = vld [vmem:[%s3729_s13] sm:$0xff]   ;;  %s4388_s8 = scalar_lea.hbm %s4445_s7, %s2861_s22  ;;  %p4460_p9 = scmp.ne.s32.totalorder %s4449_s11, 0 }
  0x3f   : > { %2781 = vmatpush3.bf16.msra.mxu0 %v2920_v4  ;;  %2768 = vmatprep.mubr.msk.bf16.mxu0 %vm410_vm1, %v2922_v6  ;;  %v2952_v23 = vld [vmem:[#allocation2 + $0x38] ss:$28 sps:$4 sm:$0xff]   ;;  %v2958_v25 = vld [vmem:[#allocation2 + $0x70] ss:$28 sps:$4 sm:$0xff]   ;;  %v2943_v29 = vld [vmem:[#allocation2 + $0x8] ss:$28 sps:$4 sm:$0xff]  }
  0x40   : > { %2782 = vmatprep.subr.bf16.mxu0 %v2921_v5  ;;  %1180 = vmatpush1.bf16.msra.mxu1 %v2952_v23  ;;  %v2934_v26 = vld [vmem:[%s3729_s13 + $0x8] sm:$0xff]   ;;  %v2935_v28 = vld [vmem:[%s3729_s13 + $0x10] sm:$0xff]   ;;  %v2951_v30 = vld [vmem:[#allocation2 + $0x44] ss:$28 sps:$4 sm:$0xff]   ;;  %s3910_s20 = scalar_lea.vmem [#allocation5], %s3889_s16  ;;  %s3570_s9 = smov [#allocation5]  }
  0x41   : > { %1181 = vmatprep.subr.bf16.mxu1 %v2953_v24  ;;  %v2964_v31 = vld [vmem:[#allocation2 + $0xa8] ss:$28 sps:$4 sm:$0xff]   ;;  %v2949_v32 = vld [vmem:[#allocation2 + $0x40] ss:$28 sps:$4 sm:$0xff]   ;;  %v2955_v39 = vld [vmem:[#allocation2 + $0x78] ss:$28 sps:$4 sm:$0xff]  }
  0x42   : > { %v2965_v33 = vld [vmem:[#allocation2 + $0xe4] ss:$28 sps:$4 sm:$0xff]   ;;  %v2957_v34 = vld [vmem:[#allocation2 + $0x7c] ss:$28 sps:$4 sm:$0xff]   ;;  %v2963_v40 = vld [vmem:[#allocation2 + $0xb4] ss:$28 sps:$4 sm:$0xff]  }
  0x43   : > { %2783 = vmatpush3.bf16.msra.mxu0 %v2921_v5  ;;  %v2970_v35 = vld [vmem:[#allocation2 + $0xe0] ss:$28 sps:$4 sm:$0xff]   ;;  %v2976_v41 = vld [vmem:[#allocation2 + $0x118] ss:$28 sps:$4 sm:$0xff]   ;;  %v2961_v42 = vld [vmem:[#allocation2 + $0xb0] ss:$28 sps:$4 sm:$0xff]  }
  0x44   : > { %2784 = vmatprep.subr.bf16.mxu0 %v2924_v7  ;;  %1182 = vmatpush1.bf16.msra.mxu1 %v2958_v25  ;;  %v2971_v36 = vld [vmem:[#allocation2 + $0x11c] ss:$28 sps:$4 sm:$0xff]   ;;  %v2937_v38 = vld [vmem:[%s3729_s13 + $0x20] sm:$0xff]   ;;  %v2969_v43 = vld [vmem:[#allocation2 + $0xec] ss:$28 sps:$4 sm:$0xff]   ;;  %s2412_s23 = sshll.u32 %s3910_s20, 4  ;;  %s4391_s23 = int_to_ptr.vmem [resolvable:$true] %s2412_s23 }
  0x45   : > { %1183 = vmatprep.subr.bf16.mxu1 %v2959_v27  ;;  %v2936_v37 = vld [vmem:[%s3729_s13 + $0x18] sm:$0xff]   ;;  %v2938_v44 = vld [vmem:[%s3729_s13 + $0x28] sm:$0xff]   ;;  %v2939_v45 = vld [vmem:[%s3729_s13 + $0x30] sm:$0xff]   ;;  %s3498_s21 = scalar_lea.vmem %s4391_s23, 14336  ;;  %s3502_s14 = sshll.u32 %s3570_s9, 4  ;;  %s3503_s14 = int_to_ptr.vmem [resolvable:$false] %s3502_s14 }
  0x46   : > { %2769 = vmatmul.mubr.msk.bf16.gmra.mrb[4].mxu0 %vm410_vm1, %v2923_v8  ;;  %v2967_v46 = vld [vmem:[#allocation2 + $0xe8] ss:$28 sps:$4 sm:$0xff]   ;;  %v2973_v48 = vld [vmem:[#allocation2 + $0x120] ss:$28 sps:$4 sm:$0xff]   ;;  %v2977_v50 = vld [vmem:[#allocation2 + $0x154] ss:$28 sps:$4 sm:$0xff]   ;;  %p3499_p6 = scmp.ne.s32.totalorder %s4391_s23, %s3498_s21  ;;  %p3505_p2 = scmp.lt.s32.totalorder %s4391_s23, %s3503_s14 }
  0x47   : > { %2785 = vmatpush3.bf16.msra.mxu0 %v2924_v7  ;;  %2772 = vmatprep.mubr.msk.bf16.mxu0 %vm410_vm1, %v2926_v9  ;;  %v2975_v47 = vld [vmem:[#allocation2 + $0x124] ss:$28 sps:$4 sm:$0xff]   ;;  %v2940_v49 = vld [vmem:[%s3729_s13 + $0x38] sm:$0xff]   ;;  %v2982_v53 = vld [vmem:[#allocation2 + $0x150] ss:$28 sps:$4 sm:$0xff]   ;;  %s3504_s17 = scalar_lea.vmem %s3503_s14, 28672 }
  0x48   : > { %2786 = vmatprep.subr.bf16.mxu0 %v2925_v10  ;;  %1184 = vmatpush1.bf16.msra.mxu1 %v2964_v31  ;;  %v2981_v51 = vld [vmem:[#allocation2 + $0x15c] ss:$28 sps:$4 sm:$0xff]   ;;  %v2983_v54 = vld [vmem:[#allocation2 + $0x18c] ss:$28 sps:$4 sm:$0xff]   ;;  %v2987_v55 = vld [vmem:[#allocation2 + $0x194] ss:$28 sps:$4 sm:$0xff]   ;;  %p3500_p10 = pnand %p3499_p6, %p4460_p9  ;;  %p3506_p3 = scmp.lt.s32.totalorder %s3504_s17, %s3498_s21 }
  0x49   : > { %1185 = vmatprep.subr.bf16.mxu1 %v2965_v33  ;;  %v2979_v52 = vld [vmem:[#allocation2 + $0x158] ss:$28 sps:$4 sm:$0xff]   ;;  %v2985_v56 = vld [vmem:[#allocation2 + $0x190] ss:$28 sps:$4 sm:$0xff]   ;;  %v2988_v57 = vld [vmem:[#allocation2 + $0x188] ss:$28 sps:$4 sm:$0xff]  }
  0x4a   : > { %v2991_v59 = vld [vmem:[#allocation2 + $0x14] ss:$28 sps:$4 sm:$0xff]   ;;  %v3768_v61 = vld [vmem:[%s4442_s4] ss:$0 sm:$0xff]  ;;  %v3009_v33 = vld [vmem:[#allocation2 + $0x88] ss:$28 sps:$4 sm:$0xff]   ;;  %p3501_p12 = pneg %p3500_p10  ;;  %p3507_p4 = por %p3506_p3, %p3505_p2 }
  0x4b   : > { %2787 = vmatpush3.bf16.msra.mxu0 %v2925_v10  ;;  %v3004_v60 = vld [vmem:[#allocation2 + $0x18] ss:$28 sps:$4 sm:$0xff]   ;;  %v3005_v19 = vld [vmem:[#allocation2 + $0x50] ss:$28 sps:$4 sm:$0xff]   ;;  %v2997_v24 = vld [vmem:[#allocation2 + $0x84] ss:$28 sps:$4 sm:$0xff]  }
  0x4c   : > { %2788 = vmatprep.subr.bf16.mxu0 %v2928_v11  ;;  %1186 = vmatpush1.bf16.msra.mxu1 %v2970_v35  ;;  %p3508_p7 = pnand %p3507_p4, %p3501_p12 }
  0x4d   : > { %1187 = vmatprep.subr.bf16.mxu1 %v2971_v36  ;;  %v3000_v36 = vld [vmem:[#allocation2 + $0xbc] ss:$28 sps:$4 sm:$0xff]  }
  0x4e   : > { %2773 = vmatmul.mubr.msk.bf16.gmra.mrb[8].mxu0 %vm410_vm1, %v2927_v12 }
  0x4f   : > { %2789 = vmatpush3.bf16.msra.mxu0 %v2928_v11  ;;  %2776 = vmatprep.mubr.msk.bf16.mxu0 %vm410_vm1, %v2929_v13  ;;  %v2989_v11 = vld [vmem:[#allocation2 + $0x10] ss:$28 sps:$4 sm:$0xff]  }
  0x50   : > { %2790 = vmatprep.subr.bf16.mxu0 %v2930_v14  ;;  %1188 = vmatpush1.bf16.msra.mxu1 %v2976_v41 }
  0x51   : > { %1189 = vmatprep.subr.bf16.mxu1 %v2977_v50 }
  0x53   : > { %2791 = vmatpush3.bf16.msra.mxu0 %v2930_v14  ;;  %v2994_v14 = vld [vmem:[#allocation2 + $0x4c] ss:$28 sps:$4 sm:$0xff]  }
  0x54   : > { %2859 = vmatprep.subr.msk.bf16.mxu0 %vm640_vm2, %v2932_v15  ;;  %1190 = vmatpush1.bf16.msra.mxu1 %v2982_v53  ;;  %v3014_v53 = vld [vmem:[#allocation2 + $0xf8] ss:$28 sps:$4 sm:$0xff]  }
  0x55   : > { %1191 = vmatprep.subr.bf16.mxu1 %v2983_v54 }
  0x56   : > { %2777 = vmatmul.mubr.msk.bf16.gmra.mrb[12].mxu0 %vm410_vm1, %v2931_v17 }
  0x57   : > { %2793 = vmatpush3.bf16.msra.mxu0 %v642_v21  ;;  %2794 = vmatprep.mubr.msk.bf16.mxu0 %vm615_vm3, %v2933_v18 }
  0x58   : > { %1290 = vmatprep.subr.bf16.mxu0 %v2945_v22  ;;  %1192 = vmatpush1.bf16.msra.mxu1 %v2988_v57  ;;  %v2992_v22 = vld [vmem:[#allocation2 + $0x48] ss:$28 sps:$4 sm:$0xff]  }
  0x59   : > { %1403 = vmatprep.subr.bf16.mxu1 %v2991_v59 }
  0x5e   : > { %2795 = vmatmul.mubr.msk.bf16.vlgmr.msra.gmra.mrb[0].mxu0 %vm615_vm3, %v2934_v26 }
  0x5f   : > { %2798 = vmatprep.mubr.msk.bf16.mxu0 %vm615_vm3, %v2935_v28  ;;  %1291 = vmatpush1.bf16.msra.mxu0 %v2943_v29 }
  0x60   : > { %1292 = vmatprep.subr.bf16.mxu0 %v2951_v30 }
  0x63   : > { %1293 = vmatpush1.bf16.msra.mxu0 %v2949_v32  ;;  %v2995_v32 = vld [vmem:[#allocation2 + $0x80] ss:$28 sps:$4 sm:$0xff]  }
  0x64   : > { %1294 = vmatprep.subr.bf16.mxu0 %v2957_v34 }
  0x66   : > { %2799 = vmatmul.mubr.msk.bf16.gmra.mrb[4].mxu0 %vm615_vm3, %v2936_v37 }
  0x67   : > { %2802 = vmatprep.mubr.msk.bf16.mxu0 %vm615_vm3, %v2937_v38  ;;  %1295 = vmatpush1.bf16.msra.mxu0 %v2955_v39  ;;  %v3010_v39 = vld [vmem:[#allocation2 + $0xc0] ss:$28 sps:$4 sm:$0xff]  }
  0x68   : > { %1296 = vmatprep.subr.bf16.mxu0 %v2963_v40 }
  0x6b   : > { %1297 = vmatpush1.bf16.msra.mxu0 %v2961_v42 }
  0x6c   : > { %1298 = vmatprep.subr.bf16.mxu0 %v2969_v43  ;;  %v2998_v43 = vld [vmem:[#allocation2 + $0xb8] ss:$28 sps:$4 sm:$0xff]  }
  0x6e   : > { %2803 = vmatmul.mubr.msk.bf16.gmra.mrb[8].mxu0 %vm615_vm3, %v2938_v44 }
  0x6f   : > { %2806 = vmatprep.mubr.msk.bf16.mxu0 %vm615_vm3, %v2939_v45  ;;  %1299 = vmatpush1.bf16.msra.mxu0 %v2967_v46  ;;  %v3003_v46 = vld [vmem:[#allocation2 + $0xf4] ss:$28 sps:$4 sm:$0xff]  }
  0x70   : > { %1300 = vmatprep.subr.bf16.mxu0 %v2975_v47 }
  0x73   : > { %1301 = vmatpush1.bf16.msra.mxu0 %v2973_v48 }
  0x74   : > { %1302 = vmatprep.subr.bf16.mxu0 %v2981_v51 }
  0x76   : > { %2807 = vmatmul.mubr.msk.bf16.gmra.mrb[12].mxu0 %vm615_vm3, %v2940_v49 }
  0x77   : > { %1303 = vmatpush1.bf16.msra.mxu0 %v2979_v52  ;;  %1322 = vmatprep.mubr.bf16.mxu0 %v3569_v58  ;;  %v3001_v52 = vld [vmem:[#allocation2 + $0xf0] ss:$28 sps:$4 sm:$0xff]  }
  0x78   : > { %1304 = vmatprep.subr.bf16.mxu0 %v2987_v55 }
  0x7b   : > { %1305 = vmatpush1.bf16.msra.mxu0 %v2985_v56  ;;  %v3008_v56 = vld [vmem:[#allocation2 + $0x12c] ss:$28 sps:$4 sm:$0xff]  }
  0x7c   : > { %2810 = vmatprep.subr.bf16.mxu0 %v3004_v60 }
 0x131   : > { %v2796_v62 = vpop.f32.mrb[0].mxu0 }
 0x132   : > { %v750_v63 = vadd.f32 %v2796_v62, %v3768_v61  ;;  %v678_v0 = vpop.f32.mrb[1].mxu0 }
 0x133   : > { %v748_v1 = vadd.f32 %v3768_v61, %v678_v0  ;;  %v2797_v2 = vpop.f32.mrb[2].mxu0 }
 0x134   : > { %v751_v3 = vadd.f32 %v2797_v2, %v3768_v61  ;;  %v681_v4 = vpop.f32.mrb[3].mxu0  ;;  %v766_v6 = vmax.f32 %v750_v63, 0.0 }
 0x135   : > { %v749_v5 = vadd.f32 %v3768_v61, %v681_v4  ;;  %v764_v8 = vmax.f32 %v748_v1, 0.0  ;;  %v3006_v1 = vld [vmem:[#allocation2 + $0x128] ss:$28 sps:$4 sm:$0xff]  }
 0x136   : > { %v767_v7 = vmax.f32 %v751_v3, 0.0  ;;  %v3013_v4 = vld [vmem:[#allocation2 + $0x164] ss:$28 sps:$4 sm:$0xff]  }
 0x137   : > { %v765_v9 = vmax.f32 %v749_v5, 0.0 }
 0x138   : > { %v3774_v10 = vpack.c.bf16 %v767_v7, %v766_v6 }
 0x139   : > { %v3776_v12 = vpack.c.bf16 %v765_v9, %v764_v8  ;;  %v2800_v13 = vpop.f32.mrb[4].mxu0  ;;  %v3011_v9 = vld [vmem:[#allocation2 + $0x160] ss:$28 sps:$4 sm:$0xff]  }
 0x13a   : > { %v754_v15 = vadd.f32 %v2800_v13, %v3768_v61  ;;  %v694_v16 = vpop.f32.mrb[5].mxu0  ;;  %v3018_v13 = vld [vmem:[#allocation2 + $0x19c] ss:$28 sps:$4 sm:$0xff]  }
 0x13b   : > { %v752_v17 = vadd.f32 %v3768_v61, %v694_v16  ;;  %v2801_v18 = vpop.f32.mrb[6].mxu0  ;;  %1210 = vmatmul.mubr.bf16.vlgmr.msra.gmra.mrb[0].mxu1 %v3776_v12  ;;  %1323 = vmatmul.mubr.bf16.vlgmr.msra.gmra.mrb[16].mxu0 %v3776_v12 }
 0x13c   : > { %v755_v20 = vadd.f32 %v2801_v18, %v3768_v61  ;;  %v697_v21 = vpop.f32.mrb[7].mxu0  ;;  %1404 = vmatpush1.bf16.msra.mxu1 %v2989_v11  ;;  %1219 = vmatprep.mubr.bf16.mxu1 %v3569_v58  ;;  %v770_v25 = vmax.f32 %v754_v15, 0.0  ;;  %v3019_v11 = vld [vmem:[#allocation2 + $0x168] ss:$28 sps:$4 sm:$0xff]  }
 0x13d   : > { %v753_v23 = vadd.f32 %v3768_v61, %v697_v21  ;;  %1332 = vmatprep.mubr.bf16.mxu0 %v3569_v58  ;;  %1405 = vmatprep.subr.bf16.mxu1 %v2994_v14  ;;  %v768_v27 = vmax.f32 %v752_v17, 0.0  ;;  %v3016_v14 = vld [vmem:[#allocation2 + $0x198] ss:$28 sps:$4 sm:$0xff]   ;;  %v3851_v17 = vld [vmem:[%s4444_s6] sm:$0xff] }
 0x13e   : > { %v771_v26 = vmax.f32 %v755_v20, 0.0  ;;  %2811 = vmatpush3.bf16.msra.mxu0 %v3004_v60  ;;  %v3015_v60 = vld [vmem:[#allocation2 + $0x130] ss:$28 sps:$4 sm:$0xff]  }
 0x13f   : > { %v769_v28 = vmax.f32 %v753_v23, 0.0  ;;  %2812 = vmatprep.subr.bf16.mxu0 %v3005_v19 }
 0x140   : > { %v3786_v29 = vpack.c.bf16 %v771_v26, %v770_v25  ;;  %1406 = vmatpush1.bf16.msra.mxu1 %v2992_v22 }
 0x141   : > { %v3788_v30 = vpack.c.bf16 %v769_v28, %v768_v27  ;;  %v2804_v31 = vpop.f32.mrb[8].mxu0  ;;  %1407 = vmatprep.subr.bf16.mxu1 %v2997_v24 }
 0x142   : > { %v758_v34 = vadd.f32 %v2804_v31, %v3768_v61  ;;  %v710_v35 = vpop.f32.mrb[9].mxu0  ;;  %2813 = vmatpush3.bf16.msra.mxu0 %v3005_v19 }
 0x143   : > { %v756_v37 = vadd.f32 %v3768_v61, %v710_v35  ;;  %v2805_v38 = vpop.f32.mrb[10].mxu0  ;;  %1220 = vmatmul.mubr.bf16.gmra.mrb[4].mxu1 %v3774_v10  ;;  %1333 = vmatmul.mubr.bf16.gmra.mrb[20].mxu0 %v3774_v10 }
 0x144   : > { %v759_v40 = vadd.f32 %v2805_v38, %v3768_v61  ;;  %v713_v41 = vpop.f32.mrb[11].mxu0  ;;  %1229 = vmatprep.mubr.bf16.mxu1 %v3569_v58  ;;  %1342 = vmatprep.mubr.bf16.mxu0 %v3569_v58  ;;  %v774_v44 = vmax.f32 %v758_v34, 0.0 }
 0x145   : > { %v757_v42 = vadd.f32 %v3768_v61, %v713_v41  ;;  %1408 = vmatpush1.bf16.msra.mxu1 %v2995_v32  ;;  %2814 = vmatprep.subr.bf16.mxu0 %v3009_v33  ;;  %v772_v47 = vmax.f32 %v756_v37, 0.0 }
 0x146   : > { %v775_v45 = vmax.f32 %v759_v40, 0.0  ;;  %1409 = vmatprep.subr.bf16.mxu1 %v3000_v36  ;;  %2815 = vmatpush3.bf16.msra.mxu0 %v3009_v33 }
 0x147   : > { %v773_v48 = vmax.f32 %v757_v42, 0.0  ;;  %2816 = vmatprep.subr.bf16.mxu0 %v3010_v39 }
 0x148   : > { %v3798_v49 = vpack.c.bf16 %v775_v45, %v774_v44 }
 0x149   : > { %v3800_v50 = vpack.c.bf16 %v773_v48, %v772_v47  ;;  %v2808_v51 = vpop.f32.mrb[12].mxu0  ;;  %1410 = vmatpush1.bf16.msra.mxu1 %v2998_v43 }
 0x14a   : > { %v762_v54 = vadd.f32 %v2808_v51, %v3768_v61  ;;  %v726_v55 = vpop.f32.mrb[13].mxu0  ;;  %1411 = vmatprep.subr.bf16.mxu1 %v3003_v46  ;;  %2817 = vmatpush3.bf16.msra.mxu0 %v3010_v39 }
 0x14b   : > { %v760_v57 = vadd.f32 %v3768_v61, %v726_v55  ;;  %v2809_v59 = vpop.f32.mrb[14].mxu0  ;;  %1230 = vmatmul.mubr.bf16.gmra.mrb[8].mxu1 %v3788_v30  ;;  %1343 = vmatmul.mubr.bf16.gmra.mrb[24].mxu0 %v3788_v30 }
 0x14c   : > { %v763_v62 = vadd.f32 %v2809_v59, %v3768_v61  ;;  %v729_v63 = vpop.f32.mrb[15].mxu0  ;;  %1239 = vmatprep.mubr.bf16.mxu1 %v3569_v58  ;;  %1352 = vmatprep.mubr.bf16.mxu0 %v3569_v58  ;;  %v778_v2 = vmax.f32 %v762_v54, 0.0 }
 0x14d   : > { %v761_v0 = vadd.f32 %v3768_v61, %v729_v63  ;;  %1412 = vmatpush1.bf16.msra.mxu1 %v3001_v52  ;;  %2818 = vmatprep.subr.bf16.mxu0 %v3014_v53  ;;  %v776_v5 = vmax.f32 %v760_v57, 0.0  ;;  %v3020_v61 = vld [vmem:[#allocation2 + $0x1a0] ss:$28 sps:$4 sm:$0xff]  }
 0x14e   : > { %v779_v3 = vmax.f32 %v763_v62, 0.0  ;;  %1413 = vmatprep.subr.bf16.mxu1 %v3008_v56  ;;  %2819 = vmatpush3.bf16.msra.mxu0 %v3014_v53 }
 0x14f   : > { %v777_v6 = vmax.f32 %v761_v0, 0.0  ;;  %2820 = vmatprep.subr.bf16.mxu0 %v3015_v60 }
 0x150   : > { %v787_v7 = vpack.c.bf16 %v779_v3, %v778_v2 }
 0x151   : > { %v786_v8 = vpack.c.bf16 %v777_v6, %v776_v5  ;;  %1414 = vmatpush1.bf16.msra.mxu1 %v3006_v1 }
 0x152   : > { %1415 = vmatprep.subr.bf16.mxu1 %v3013_v4  ;;  %2821 = vmatpush3.bf16.msra.mxu0 %v3015_v60 }
 0x153   : > { %1240 = vmatmul.mubr.bf16.gmra.mrb[12].mxu1 %v3786_v29  ;;  %1353 = vmatmul.mubr.bf16.gmra.mrb[28].mxu0 %v3786_v29 }
 0x154   : > { %1249 = vmatprep.mubr.bf16.mxu1 %v3569_v58  ;;  %1362 = vmatprep.mubr.bf16.mxu0 %v3569_v58 }
 0x155   : > { %1416 = vmatpush1.bf16.msra.mxu1 %v3011_v9  ;;  %2822 = vmatprep.subr.bf16.mxu0 %v3019_v11 }
 0x156   : > { %1417 = vmatprep.subr.bf16.mxu1 %v3018_v13  ;;  %2823 = vmatpush3.bf16.msra.mxu0 %v3019_v11 }
 0x157   : > { %2824 = vmatprep.subr.bf16.mxu0 %v3020_v61 }
 0x159   : > { %1418 = vmatpush1.bf16.msra.mxu1 %v3016_v14 }
 0x15a   : > { %2825 = vmatpush3.bf16.msra.mxu0 %v3020_v61 }
 0x15b   : > { %1250 = vmatmul.mubr.bf16.gmra.mrb[16].mxu1 %v3800_v50  ;;  %1363 = vmatmul.mubr.bf16.gmra.mrb[32].mxu0 %v3800_v50 }
 0x15c   : > { %1259 = vmatprep.mubr.bf16.mxu1 %v3569_v58  ;;  %1372 = vmatprep.mubr.bf16.mxu0 %v3569_v58 }
 0x163   : > { %1260 = vmatmul.mubr.bf16.gmra.mrb[20].mxu1 %v3798_v49  ;;  %1373 = vmatmul.mubr.bf16.gmra.mrb[36].mxu0 %v3798_v49 }
 0x164   : > { %1269 = vmatprep.mubr.bf16.mxu1 %v3569_v58  ;;  %1382 = vmatprep.mubr.bf16.mxu0 %v3569_v58 }
 0x16b   : > { %1270 = vmatmul.mubr.bf16.gmra.mrb[24].mxu1 %v786_v8  ;;  %1383 = vmatmul.mubr.bf16.gmra.mrb[40].mxu0 %v786_v8 }
 0x16c   : > { %1279 = vmatprep.mubr.bf16.mxu1 %v3569_v58  ;;  %1392 = vmatprep.mubr.bf16.mxu0 %v3569_v58 }
 0x173   : > { %1280 = vmatmul.mubr.bf16.gmra.mrb[28].mxu1 %v787_v7  ;;  %1393 = vmatmul.mubr.bf16.gmra.mrb[44].mxu0 %v787_v7 }
 0x174   : > { %2826 = vmatprep.mubr.bf16.mxu0 %v3776_v12  ;;  %1435 = vmatprep.mubr.bf16.mxu1 %v3569_v58 }
 0x17b   : > { %1436 = vmatmul.mubr.bf16.vlgmr.msra.gmra.mrb[32].mxu1 %v3776_v12  ;;  %2827 = vmatmul.mubr.bf16.vlgmr.msra.gmra.mrb[48].mxu0 %v3774_v10 }
 0x17c   : > { %2830 = vmatprep.mubr.bf16.mxu0 %v3788_v30  ;;  %1445 = vmatprep.mubr.bf16.mxu1 %v3569_v58 }
 0x183   : > { %1446 = vmatmul.mubr.bf16.gmra.mrb[36].mxu1 %v3774_v10  ;;  %2831 = vmatmul.mubr.bf16.gmra.mrb[52].mxu0 %v3786_v29  ;;  %v854_v10 = vlaneseq }
 0x184   : > { %2834 = vmatprep.mubr.bf16.mxu0 %v3800_v50  ;;  %1455 = vmatprep.mubr.bf16.mxu1 %v3569_v58 }
 0x185   : > { %v3844_v12 = vshrl.u32 %v854_v10, 7 }
 0x187   : > { %v856_v15 = vsub.s32 0, %v3844_v12  ;;  %v864_v16 = vsub.s32 2, %v3844_v12  ;;  %v860_v18 = vsub.s32 1, %v3844_v12  ;;  %v868_v19 = vsub.s32 3, %v3844_v12 }
 0x189   : > { %v3856_v20 = vrot.slane %v3851_v17, %v856_v15  ;;  %v3862_v21 = vrot.slane %v3851_v17, %v860_v18  ;;  %v3865_v22 = vrot.slane %v3851_v17, %v868_v19 }
 0x18b   : > { %1456 = vmatmul.mubr.bf16.gmra.mrb[40].mxu1 %v3788_v30  ;;  %2835 = vmatmul.mubr.bf16.gmra.mrb[56].mxu0 %v3798_v49 }
 0x18c   : > { %2838 = vmatprep.mubr.bf16.mxu0 %v786_v8  ;;  %1465 = vmatprep.mubr.bf16.mxu1 %v3569_v58 }
 0x193   : > { %1466 = vmatmul.mubr.bf16.gmra.mrb[44].mxu1 %v3786_v29  ;;  %2839 = vmatmul.mubr.bf16.gmra.mrb[60].mxu0 %v787_v7 }
 0x194   : > { %1475 = vmatprep.mubr.bf16.mxu1 %v3569_v58 }
 0x19b   : > { %1476 = vmatmul.mubr.bf16.gmra.mrb[48].mxu1 %v3800_v50 }
 0x19c   : > { %1485 = vmatprep.mubr.bf16.mxu1 %v3569_v58 }
 0x1a3   : > { %1486 = vmatmul.mubr.bf16.gmra.mrb[52].mxu1 %v3798_v49 }
 0x1a4   : > { %1495 = vmatprep.mubr.bf16.mxu1 %v3569_v58 }
 0x1ab   : > { %1496 = vmatmul.mubr.bf16.gmra.mrb[56].mxu1 %v786_v8 }
 0x1ac   : > { %1505 = vmatprep.mubr.bf16.mxu1 %v3569_v58  ;;  %v3859_v58 = vrot.slane %v3851_v17, %v864_v16 }
 0x1b3   : > { %1506 = vmatmul.mubr.bf16.gmra.mrb[60].mxu1 %v787_v7 }
 0x20e   : > { %v1211_v23 = vpop.f32.mrb[0].mxu1  ;;  %v1324_v24 = vpop.f32.mrb[16].mxu0 }
 0x20f   : > { %v1212_v25 = vadd.f32 %v1211_v23, %v3856_v20  ;;  %v1325_v26 = vadd.f32 %v1324_v24, %v3859_v58  ;;  %v1213_v27 = vpop.f32.mrb[1].mxu1  ;;  %v1326_v28 = vpop.f32.mrb[17].mxu0 }
 0x210   : > { %v1214_v29 = vadd.f32 %v1213_v27, %v3862_v21  ;;  %v1327_v30 = vadd.f32 %v1326_v28, %v3865_v22  ;;  %v1215_v31 = vpop.f32.mrb[2].mxu1  ;;  %v1328_v32 = vpop.f32.mrb[18].mxu0 }
 0x211   : > { %v2605_v33 = vmul.f32 -1.442695, %v1212_v25  ;;  %v2607_v34 = vmul.f32 -1.442695, %v1325_v26  ;;  %v1216_v35 = vadd.f32 %v1215_v31, %v3856_v20  ;;  %v1329_v36 = vadd.f32 %v1328_v32, %v3859_v58  ;;  %v1217_v37 = vpop.f32.mrb[3].mxu1  ;;  %v1330_v38 = vpop.f32.mrb[19].mxu0 }
 0x212   : > { %v2606_v39 = vmul.f32 -1.442695, %v1214_v29  ;;  %v2608_v40 = vmul.f32 -1.442695, %v1327_v30  ;;  %v1218_v41 = vadd.f32 %v1217_v37, %v3862_v21  ;;  %v1331_v42 = vadd.f32 %v1330_v38, %v3865_v22 }
 0x213   : > { %3021 = vpow2.f32 %v2605_v33  ;;  %v2612_v43 = vmul.f32 -1.442695, %v1216_v35  ;;  %v2614_v44 = vmul.f32 -1.442695, %v1329_v36 }
 0x214   : > { %3023 = vpow2.f32 %v2607_v34  ;;  %v2613_v45 = vmul.f32 -1.442695, %v1218_v41  ;;  %v2615_v46 = vmul.f32 -1.442695, %v1331_v42 }
 0x215   : > { %3025 = vpow2.f32 %v2606_v39 }
 0x216   : > { %3027 = vpow2.f32 %v2608_v40  ;;  %v1221_v47 = vpop.f32.mrb[4].mxu1  ;;  %v1334_v48 = vpop.f32.mrb[20].mxu0 }
 0x217   : > { %3029 = vpow2.f32 %v2612_v43  ;;  %v1222_v49 = vadd.f32 %v1221_v47, %v3856_v20  ;;  %v1335_v50 = vadd.f32 %v1334_v48, %v3859_v58  ;;  %v1223_v51 = vpop.f32.mrb[5].mxu1  ;;  %v1336_v52 = vpop.f32.mrb[21].mxu0 }
 0x218   : > { %3031 = vpow2.f32 %v2614_v44  ;;  %v1224_v53 = vadd.f32 %v1223_v51, %v3862_v21  ;;  %v1337_v54 = vadd.f32 %v1336_v52, %v3865_v22  ;;  %v1225_v55 = vpop.f32.mrb[6].mxu1  ;;  %v1338_v56 = vpop.f32.mrb[22].mxu0 }
 0x219   : > { %3033 = vpow2.f32 %v2613_v45  ;;  %v2619_v57 = vmul.f32 -1.442695, %v1222_v49  ;;  %v2621_v59 = vmul.f32 -1.442695, %v1335_v50  ;;  %v1226_v60 = vadd.f32 %v1225_v55, %v3856_v20  ;;  %v1227_v62 = vpop.f32.mrb[7].mxu1  ;;  %v1340_v63 = vpop.f32.mrb[23].mxu0 }
 0x21a   : > { %3035 = vpow2.f32 %v2615_v46  ;;  %v2620_v0 = vmul.f32 -1.442695, %v1224_v53  ;;  %v2622_v1 = vmul.f32 -1.442695, %v1337_v54  ;;  %v1339_v32 = vadd.f32 %v1338_v56, %v3859_v58 }
 0x21b   : > { %3037 = vpow2.f32 %v2619_v57  ;;  %v2626_v2 = vmul.f32 -1.442695, %v1226_v60  ;;  %v1228_v35 = vadd.f32 %v1227_v62, %v3862_v21  ;;  %v1341_v39 = vadd.f32 %v1340_v63, %v3865_v22 }
 0x21c   : > { %3039 = vpow2.f32 %v2621_v59  ;;  %v2628_v49 = vmul.f32 -1.442695, %v1339_v32 }
 0x21d   : > { %v3022_v3 = vpop.eup %3021  ;;  %3041 = vpow2.f32 %v2620_v0  ;;  %v2627_v55 = vmul.f32 -1.442695, %v1228_v35  ;;  %v2629_v60 = vmul.f32 -1.442695, %v1341_v39 }
 0x21e   : > { %v3024_v4 = vpop.eup %3023  ;;  %v1949_v5 = vadd.f32 1.0, %v3022_v3  ;;  %3043 = vpow2.f32 %v2622_v1  ;;  %v1231_v6 = vpop.f32.mrb[8].mxu1 }
 0x21f   : > { %v1344_v7 = vpop.f32.mrb[24].mxu0  ;;  %v3026_v8 = vpop.eup %3025  ;;  %v1951_v9 = vadd.f32 1.0, %v3024_v4  ;;  %3045 = vpow2.f32 %v2626_v2  ;;  %v1232_v44 = vadd.f32 %v1231_v6, %v3856_v20 }
 0x220   : > { %v1233_v11 = vpop.f32.mrb[9].mxu1  ;;  %v1346_v13 = vpop.f32.mrb[25].mxu0  ;;  %3047 = vrcp.f32 %v1949_v5  ;;  %v1950_v14 = vadd.f32 1.0, %v3026_v8  ;;  %v1345_v50 = vadd.f32 %v1344_v7, %v3859_v58 }
 0x221   : > { %v3028_v61 = vpop.eup %3027  ;;  %v1235_v10 = vpop.f32.mrb[10].mxu1  ;;  %3049 = vrcp.f32 %v1951_v9  ;;  %v1234_v56 = vadd.f32 %v1233_v11, %v3862_v21  ;;  %v1347_v62 = vadd.f32 %v1346_v13, %v3865_v22  ;;  %v2633_v0 = vmul.f32 -1.442695, %v1232_v44 }
 0x222   : > { %v3880_v15 = vpop.f32.mrb[26].mxu0  ;;  %v3030_v16 = vpop.eup %3029  ;;  %v1952_v18 = vadd.f32 1.0, %v3028_v61  ;;  %3051 = vrcp.f32 %v1950_v14  ;;  %v1236_v1 = vadd.f32 %v1235_v10, %v3856_v20  ;;  %v2635_v3 = vmul.f32 -1.442695, %v1345_v50 }
 0x223   : > { %v3883_v19 = vpop.f32.mrb[11].mxu1  ;;  %v3032_v23 = vpop.eup %3031  ;;  %v1956_v24 = vadd.f32 1.0, %v3030_v16  ;;  %v1349_v4 = vadd.f32 %v3880_v15, %v3859_v58  ;;  %v2634_v6 = vmul.f32 -1.442695, %v1234_v56  ;;  %v2636_v13 = vmul.f32 -1.442695, %v1347_v62 }
 0x224   : > { %v3885_v25 = vpop.f32.mrb[27].mxu0  ;;  %v3034_v26 = vpop.eup %3033  ;;  %3053 = vrcp.f32 %v1952_v18  ;;  %v1958_v27 = vadd.f32 1.0, %v3032_v23  ;;  %v1238_v7 = vadd.f32 %v3883_v19, %v3862_v21  ;;  %v2640_v16 = vmul.f32 -1.442695, %v1236_v1 }
 0x225   : > { %v3036_v28 = vpop.eup %3035  ;;  %3055 = vrcp.f32 %v1956_v24  ;;  %v1957_v29 = vadd.f32 1.0, %v3034_v26  ;;  %v1351_v61 = vadd.f32 %v3885_v25, %v3865_v22  ;;  %v2642_v25 = vmul.f32 -1.442695, %v1349_v4 }
 0x226   : > { %v3038_v30 = vpop.eup %3037  ;;  %3057 = vrcp.f32 %v1958_v27  ;;  %v1959_v31 = vadd.f32 1.0, %v3036_v28  ;;  %v1241_v36 = vpop.f32.mrb[12].mxu1 }
 0x227   : > { %v3040_v33 = vpop.eup %3039  ;;  %3059 = vrcp.f32 %v1957_v29  ;;  %v1963_v34 = vadd.f32 1.0, %v3038_v30  ;;  %v1354_v40 = vpop.f32.mrb[28].mxu0  ;;  %v1242_v18 = vadd.f32 %v1241_v36, %v3856_v20  ;;  %v2641_v30 = vmul.f32 -1.442695, %v1238_v7 }
 0x228   : > { %v3042_v37 = vpop.eup %3041  ;;  %3061 = vrcp.f32 %v1959_v31  ;;  %v1965_v38 = vadd.f32 1.0, %v3040_v33  ;;  %v3894_v41 = vpop.f32.mrb[13].mxu1  ;;  %v1355_v26 = vadd.f32 %v1354_v40, %v3859_v58  ;;  %v2643_v32 = vmul.f32 -1.442695, %v1351_v61 }
 0x229   : > { %v3044_v42 = vpop.eup %3043  ;;  %3063 = vrcp.f32 %v1963_v34  ;;  %v1964_v43 = vadd.f32 1.0, %v3042_v37  ;;  %v3897_v45 = vpop.f32.mrb[29].mxu0  ;;  %v2647_v35 = vmul.f32 -1.442695, %v1242_v18  ;;  %v1244_v62 = vadd.f32 %v3894_v41, %v3862_v21 }
 0x22a   : > { %v3899_v46 = vpop.f32.mrb[14].mxu1  ;;  %v3046_v47 = vpop.eup %3045  ;;  %3065 = vrcp.f32 %v1965_v38  ;;  %v1966_v48 = vadd.f32 1.0, %v3044_v42  ;;  %v2649_v37 = vmul.f32 -1.442695, %v1355_v26 }
 0x22b   : > { %v3902_v51 = vpop.f32.mrb[30].mxu0  ;;  %v3904_v52 = vpop.f32.mrb[15].mxu1  ;;  %3067 = vrcp.f32 %v1964_v43  ;;  %v1970_v54 = vadd.f32 1.0, %v3046_v47  ;;  %v1246_v26 = vadd.f32 %v3899_v46, %v3856_v20 }
 0x22c   : > { %v3048_v53 = vpop.eup %3047  ;;  %v3907_v57 = vpop.f32.mrb[31].mxu0  ;;  %3069 = vrcp.f32 %v1966_v48 }
 0x22d   : > { %v3050_v59 = vpop.eup %3049  ;;  %2285 = vst [vmem:[%s3910_s20] sm:$0xff] %v3048_v53  ;;  %3071 = vrcp.f32 %v1970_v54 }
 0x22e   : > { %v3052_v63 = vpop.eup %3051  ;;  %2287 = vst [vmem:[%s3910_s20 + $0x10] sm:$0xff] %v3050_v59  ;;  %3073 = vpow2.f32 %v2628_v49  ;;  %v3922_v8 = vpop.f32.mrb[16].mxu1 }
 0x22f   : > { %v3054_v2 = vpop.eup %3053  ;;  %2286 = vst [vmem:[%s3910_s20 + $0x8] sm:$0xff] %v3052_v63  ;;  %3075 = vpow2.f32 %v2627_v55  ;;  %v3924_v9 = vpop.f32.mrb[32].mxu0 }
 0x230   : > { %v3056_v5 = vpop.eup %3055  ;;  %2288 = vst [vmem:[%s3910_s20 + $0x18] sm:$0xff] %v3054_v2  ;;  %3077 = vpow2.f32 %v2629_v60  ;;  %v3929_v14 = vpop.f32.mrb[17].mxu1  ;;  %v1357_v2 = vadd.f32 %v3897_v45, %v3865_v22 }
 0x231   : > { %v3058_v11 = vpop.eup %3057  ;;  %2292 = vst [vmem:[%s3910_s20 + $0x38] sm:$0xff] %v3056_v5  ;;  %v3931_v10 = vpop.f32.mrb[33].mxu0  ;;  %3079 = vpow2.f32 %v2633_v0 }
 0x232   : > { %v3060_v15 = vpop.eup %3059  ;;  %2294 = vst [vmem:[%s3910_s20 + $0x48] sm:$0xff] %v3058_v11  ;;  %v3935_v19 = vpop.f32.mrb[18].mxu1  ;;  %3081 = vpow2.f32 %v2635_v3 }
 0x233   : > { %v3937_v23 = vpop.f32.mrb[34].mxu0  ;;  %v3062_v24 = vpop.eup %3061  ;;  %2293 = vst [vmem:[%s3910_s20 + $0x40] sm:$0xff] %v3060_v15  ;;  %3083 = vpow2.f32 %v2634_v6 }
 0x234   : > { %v3941_v27 = vpop.f32.mrb[19].mxu1  ;;  %v1370_v28 = vpop.f32.mrb[35].mxu0  ;;  %2295 = vst [vmem:[%s3910_s20 + $0x50] sm:$0xff] %v3062_v24  ;;  %3085 = vpow2.f32 %v2636_v13 }
 0x235   : > { %v3064_v29 = vpop.eup %3063  ;;  %v3946_v33 = vadd.f32 %v1370_v28, %v3865_v22  ;;  %3087 = vpow2.f32 %v2640_v16  ;;  %v2648_v16 = vmul.f32 -1.442695, %v1244_v62 }
 0x236   : > { %v3066_v31 = vpop.eup %3065  ;;  %2299 = vst [vmem:[%s3910_s20 + $0x70] sm:$0xff] %v3064_v29  ;;  %3089 = vpow2.f32 %v2642_v25  ;;  %v1261_v39 = vpop.f32.mrb[20].mxu1  ;;  %v3980_v25 = vmul.f32 -1.442695, %v1357_v2 }
 0x237   : > { %v3068_v34 = vpop.eup %3067  ;;  %2301 = vst [vmem:[%s3910_s20 + $0x80] sm:$0xff] %v3066_v31  ;;  %3091 = vpow2.f32 %v2641_v30  ;;  %v1374_v40 = vpop.f32.mrb[36].mxu0  ;;  %v3953_v43 = vadd.f32 %v1261_v39, %v3856_v20  ;;  %v1359_v31 = vadd.f32 %v3902_v51, %v3859_v58  ;;  %v1248_v51 = vadd.f32 %v3904_v52, %v3862_v21 }
 0x238   : > { %v3070_v36 = vpop.eup %3069  ;;  %2300 = vst [vmem:[%s3910_s20 + $0x78] sm:$0xff] %v3068_v34  ;;  %3093 = vpow2.f32 %v2643_v32  ;;  %v3956_v44 = vadd.f32 %v1374_v40, %v3859_v58  ;;  %v1263_v47 = vpop.f32.mrb[21].mxu1  ;;  %v1252_v52 = vadd.f32 %v3922_v8, %v3856_v20  ;;  %v1365_v8 = vadd.f32 %v3924_v9, %v3859_v58 }
 0x239   : > { %v3072_v38 = vpop.eup %3071  ;;  %2302 = vst [vmem:[%s3910_s20 + $0x88] sm:$0xff] %v3070_v36  ;;  %v1376_v48 = vpop.f32.mrb[37].mxu0  ;;  %3095 = vpow2.f32 %v2647_v35  ;;  %v3959_v53 = vadd.f32 %v1263_v47, %v3862_v21  ;;  %v1367_v9 = vadd.f32 %v3931_v10, %v3865_v22 }
 0x23a   : > { %v3074_v42 = vpop.eup %3073  ;;  %2306 = vst [vmem:[%s3910_s20 + $0xa8] sm:$0xff] %v3072_v38  ;;  %v3962_v54 = vadd.f32 %v1376_v48, %v3865_v22  ;;  %v1265_v55 = vpop.f32.mrb[22].mxu1  ;;  %3097 = vpow2.f32 %v2649_v37 }
 0x23b   : > { %v3076_v49 = vpop.eup %3075  ;;  %v1972_v50 = vadd.f32 1.0, %v3074_v42  ;;  %v1378_v56 = vpop.f32.mrb[38].mxu0  ;;  %v3969_v6 = vadd.f32 %v1265_v55, %v3856_v20 }
 0x23c   : > { %v3078_v59 = vpop.eup %3077  ;;  %v1971_v60 = vadd.f32 1.0, %v3076_v49  ;;  %v1267_v63 = vpop.f32.mrb[23].mxu1  ;;  %v3972_v7 = vadd.f32 %v1378_v56, %v3859_v58 }
 0x23d   : > { %v3080_v0 = vpop.eup %3079  ;;  %3099 = vrcp.f32 %v1972_v50  ;;  %v1973_v1 = vadd.f32 1.0, %v3078_v59  ;;  %v1380_v3 = vpop.f32.mrb[39].mxu0  ;;  %v3975_v13 = vadd.f32 %v1267_v63, %v3862_v21  ;;  %v2654_v59 = vmul.f32 -1.442695, %v1246_v26 }
 0x23e   : > { %v3082_v4 = vpop.eup %3081  ;;  %3101 = vrcp.f32 %v1971_v60  ;;  %v1977_v5 = vadd.f32 1.0, %v3080_v0  ;;  %v3978_v61 = vadd.f32 %v1380_v3, %v3865_v22  ;;  %v1271_v28 = vpop.f32.mrb[24].mxu1  ;;  %v1361_v60 = vadd.f32 %v3907_v57, %v3865_v22 }
 0x23f   : > { %v3084_v11 = vpop.eup %3083  ;;  %3103 = vrcp.f32 %v1973_v1  ;;  %v1979_v41 = vadd.f32 1.0, %v3082_v4  ;;  %v3987_v32 = vadd.f32 %v1271_v28, %v3856_v20  ;;  %v1384_v34 = vpop.f32.mrb[40].mxu0 }
 0x240   : > { %v3086_v45 = vpop.eup %3085  ;;  %3105 = vrcp.f32 %v1977_v5  ;;  %v1978_v15 = vadd.f32 1.0, %v3084_v11  ;;  %v1273_v35 = vpop.f32.mrb[25].mxu1  ;;  %v3990_v38 = vadd.f32 %v1384_v34, %v3859_v58  ;;  %v2656_v11 = vmul.f32 -1.442695, %v1359_v31 }
 0x241   : > { %v3088_v18 = vpop.eup %3087  ;;  %3107 = vrcp.f32 %v1979_v41  ;;  %v1980_v24 = vadd.f32 1.0, %v3086_v45  ;;  %v3993_v46 = vadd.f32 %v1273_v35, %v3862_v21  ;;  %v1386_v39 = vpop.f32.mrb[41].mxu0 }
 0x242   : > { %v3090_v29 = vpop.eup %3089  ;;  %3109 = vrcp.f32 %v1978_v15  ;;  %v1984_v30 = vadd.f32 1.0, %v3088_v18  ;;  %v1275_v40 = vpop.f32.mrb[26].mxu1  ;;  %v3998_v48 = vadd.f32 %v1386_v39, %v3865_v22  ;;  %v2655_v15 = vmul.f32 -1.442695, %v1248_v51 }
 0x243   : > { %v3092_v36 = vpop.eup %3091  ;;  %3111 = vrcp.f32 %v1980_v24  ;;  %v1986_v37 = vadd.f32 1.0, %v3090_v29  ;;  %v1388_v49 = vpop.f32.mrb[42].mxu0  ;;  %v4005_v1 = vadd.f32 %v1275_v40, %v3856_v20  ;;  %v2657_v18 = vmul.f32 -1.442695, %v1361_v60 }
 0x244   : > { %v3094_v42 = vpop.eup %3093  ;;  %3113 = vrcp.f32 %v1984_v30  ;;  %v1985_v47 = vadd.f32 1.0, %v3092_v36  ;;  %v1277_v50 = vpop.f32.mrb[27].mxu1  ;;  %v4008_v4 = vadd.f32 %v1388_v49, %v3859_v58  ;;  %v1254_v24 = vadd.f32 %v3929_v14, %v3862_v21 }
 0x245   : > { %v3096_v55 = vpop.eup %3095  ;;  %3115 = vrcp.f32 %v1986_v37  ;;  %v1987_v56 = vadd.f32 1.0, %v3094_v42  ;;  %v1390_v62 = vpop.f32.mrb[43].mxu0  ;;  %v4011_v5 = vadd.f32 %v1277_v50, %v3862_v21  ;;  %v2661_v14 = vmul.f32 -1.442695, %v1252_v52 }
 0x246   : > { %v3098_v63 = vpop.eup %3097  ;;  %3117 = vrcp.f32 %v1985_v47  ;;  %v1991_v0 = vadd.f32 1.0, %v3096_v55  ;;  %v4017_v41 = vadd.f32 %v1390_v62, %v3865_v22  ;;  %v1281_v26 = vpop.f32.mrb[28].mxu1  ;;  %v2663_v42 = vmul.f32 -1.442695, %v1365_v8 }
 0x247   : > { %v3100_v2 = vpop.eup %3099  ;;  %3119 = vrcp.f32 %v1987_v56  ;;  %v1993_v3 = vadd.f32 1.0, %v3098_v63  ;;  %v1394_v28 = vpop.f32.mrb[44].mxu0  ;;  %v4026_v30 = vadd.f32 %v1281_v26, %v3856_v20  ;;  %v1256_v47 = vadd.f32 %v3935_v19, %v3856_v20 }
 0x248   : > { %v3102_v57 = vpop.eup %3101  ;;  %2308 = vst [vmem:[%s3910_s20 + $0xb8] sm:$0xff] %v3100_v2  ;;  %3121 = vrcp.f32 %v1991_v0  ;;  %v4029_v31 = vadd.f32 %v1394_v28, %v3859_v58  ;;  %v1283_v34 = vpop.f32.mrb[29].mxu1  ;;  %v2662_v55 = vmul.f32 -1.442695, %v1254_v24  ;;  %v1369_v56 = vadd.f32 %v3937_v23, %v3859_v58 }
 0x249   : > { %v3104_v45 = vpop.eup %3103  ;;  %2307 = vst [vmem:[%s3910_s20 + $0xb0] sm:$0xff] %v3102_v57  ;;  %3123 = vrcp.f32 %v1993_v3  ;;  %v1396_v35 = vpop.f32.mrb[45].mxu0  ;;  %v4034_v37 = vadd.f32 %v1283_v34, %v3862_v21  ;;  %v2664_v23 = vmul.f32 -1.442695, %v1367_v9  ;;  %v2668_v0 = vmul.f32 -1.442695, %v1256_v47 }
 0x24a   : > { %v3106_v29 = vpop.eup %3105  ;;  %2309 = vst [vmem:[%s3910_s20 + $0xc0] sm:$0xff] %v3104_v45  ;;  %3125 = vpow2.f32 %v2648_v16  ;;  %v4037_v16 = vadd.f32 %v1396_v35, %v3865_v22  ;;  %v1285_v10 = vpop.f32.mrb[30].mxu1 }
 0x24b   : > { %v3108_v36 = vpop.eup %3107  ;;  %2313 = vst [vmem:[%s3910_s20 + $0xe0] sm:$0xff] %v3106_v29  ;;  %3127 = vpow2.f32 %v3980_v25  ;;  %v1398_v39 = vpop.f32.mrb[46].mxu0  ;;  %v4043_v51 = vadd.f32 %v1285_v10, %v3856_v20  ;;  %v1258_v20 = vadd.f32 %v3941_v27, %v3862_v21  ;;  %v2670_v27 = vmul.f32 -1.442695, %v1369_v56 }
 0x24c   : > { %v3110_v40 = vpop.eup %3109  ;;  %2315 = vst [vmem:[%s3910_s20 + $0xf0] sm:$0xff] %v3108_v36  ;;  %3129 = vpow2.f32 %v2654_v59  ;;  %v1287_v25 = vpop.f32.mrb[31].mxu1  ;;  %v4049_v59 = vadd.f32 %v1398_v39, %v3859_v58 }
 0x24d   : > { %v1400_v49 = vpop.f32.mrb[47].mxu0  ;;  %v3112_v50 = vpop.eup %3111  ;;  %2314 = vst [vmem:[%s3910_s20 + $0xe8] sm:$0xff] %v3110_v40  ;;  %3131 = vpow2.f32 %v2656_v11  ;;  %v4055_v19 = vadd.f32 %v1287_v25, %v3862_v21  ;;  %v2669_v3 = vmul.f32 -1.442695, %v1258_v20 }
 0x24e   : > { %v3114_v60 = vpop.eup %3113  ;;  %2316 = vst [vmem:[%s3910_s20 + $0xf8] sm:$0xff] %v3112_v50  ;;  %3133 = vpow2.f32 %v2655_v15  ;;  %v4058_v62 = vadd.f32 %v1400_v49, %v3865_v22  ;;  %v4063_v21 = vpop.f32.mrb[32].mxu1 }
 0x24f   : > { %v3116_v63 = vpop.eup %3115  ;;  %2320 = vst [vmem:[%s3910_s20 + $0x118] sm:$0xff] %v3114_v60  ;;  %3135 = vpow2.f32 %v2657_v18  ;;  %v4065_v2 = vpop.f32.mrb[48].mxu0 }
 0x250   : > { %v3118_v58 = vpop.eup %3117  ;;  %2322 = vst [vmem:[%s3910_s20 + $0x128] sm:$0xff] %v3116_v63  ;;  %3137 = vpow2.f32 %v2661_v14  ;;  %v4068_v57 = vpop.f32.mrb[33].mxu1 }
 0x251   : > { %v3120_v52 = vpop.eup %3119  ;;  %2321 = vst [vmem:[%s3910_s20 + $0x120] sm:$0xff] %v3118_v58  ;;  %3139 = vpow2.f32 %v2663_v42  ;;  %v4070_v11 = vpop.f32.mrb[49].mxu0 }
 0x252   : > { %v3122_v22 = vpop.eup %3121  ;;  %2323 = vst [vmem:[%s3910_s20 + $0x130] sm:$0xff] %v3120_v52  ;;  %3141 = vpow2.f32 %v2662_v55  ;;  %v4073_v45 = vpop.f32.mrb[34].mxu1 }
 0x253   : > { %v3124_v8 = vpop.eup %3123  ;;  %2327 = vst [vmem:[%s3910_s20 + $0x150] sm:$0xff] %v3122_v22  ;;  %3143 = vpow2.f32 %v2664_v23  ;;  %v4075_v15 = vpop.f32.mrb[50].mxu0 }
 0x254   : > { %v3126_v18 = vpop.eup %3125  ;;  %2329 = vst [vmem:[%s3910_s20 + $0x160] sm:$0xff] %v3124_v8  ;;  %3145 = vpow2.f32 %v2668_v0  ;;  %v4078_v24 = vpop.f32.mrb[35].mxu1 }
 0x255   : > { %v4080_v26 = vpop.f32.mrb[51].mxu0  ;;  %v3128_v28 = vpop.eup %3127  ;;  %v1992_v29 = vadd.f32 1.0, %v3126_v18  ;;  %3147 = vpow2.f32 %v2670_v27 }
 0x256   : > { %v3130_v9 = vpop.eup %3129  ;;  %v1994_v34 = vadd.f32 1.0, %v3128_v28  ;;  %3149 = vpow2.f32 %v2669_v3  ;;  %v4082_v42 = vpop.f32.mrb[36].mxu1 }
 0x257   : > { %v3132_v35 = vpop.eup %3131  ;;  %3151 = vrcp.f32 %v1992_v29  ;;  %v1998_v36 = vadd.f32 1.0, %v3130_v9  ;;  %v4084_v49 = vpop.f32.mrb[52].mxu0 }
 0x258   : > { %v3134_v14 = vpop.eup %3133  ;;  %3153 = vrcp.f32 %v1994_v34  ;;  %v2000_v10 = vadd.f32 1.0, %v3132_v35  ;;  %v4086_v50 = vpop.f32.mrb[37].mxu1  ;;  %v2671_v34 = vmul.f32 -1.442695, %v3946_v33  ;;  %v2676_v33 = vmul.f32 -1.442695, %v3959_v53 }
 0x259   : > { %v3136_v39 = vpop.eup %3135  ;;  %3155 = vrcp.f32 %v1998_v36  ;;  %v1999_v40 = vadd.f32 1.0, %v3134_v14  ;;  %v4088_v60 = vpop.f32.mrb[53].mxu0  ;;  %v2675_v14 = vmul.f32 -1.442695, %v3953_v43  ;;  %v2682_v53 = vmul.f32 -1.442695, %v3969_v6 }
 0x25a   : > { %v3138_v47 = vpop.eup %3137  ;;  %3157 = vrcp.f32 %v2000_v10  ;;  %v2001_v25 = vadd.f32 1.0, %v3136_v39  ;;  %v4090_v20 = vpop.f32.mrb[38].mxu1  ;;  %v2685_v6 = vmul.f32 -1.442695, %v3978_v61 }
 0x25b   : > { %v3140_v55 = vpop.eup %3139  ;;  %3159 = vrcp.f32 %v1999_v40  ;;  %v2005_v56 = vadd.f32 1.0, %v3138_v47  ;;  %v4092_v58 = vpop.f32.mrb[54].mxu0  ;;  %v2677_v40 = vmul.f32 -1.442695, %v3956_v44  ;;  %v2678_v44 = vmul.f32 -1.442695, %v3962_v54 }
 0x25c   : > { %v3142_v63 = vpop.eup %3141  ;;  %3161 = vrcp.f32 %v2001_v25  ;;  %v2007_v23 = vadd.f32 1.0, %v3140_v55  ;;  %v4094_v0 = vpop.f32.mrb[39].mxu1  ;;  %v872_v54 = vsub.s32 4, %v3844_v12 }
 0x25d   : > { %v3144_v52 = vpop.eup %3143  ;;  %3163 = vrcp.f32 %v2005_v56  ;;  %v2006_v27 = vadd.f32 1.0, %v3142_v63  ;;  %v4096_v22 = vpop.f32.mrb[55].mxu0 }
 0x25e   : > { %v3146_v3 = vpop.eup %3145  ;;  %3165 = vrcp.f32 %v2007_v23  ;;  %v2008_v8 = vadd.f32 1.0, %v3144_v52  ;;  %v4100_v10 = vpop.f32.mrb[40].mxu1 }
 0x25f   : > { %v3148_v18 = vpop.eup %3147  ;;  %3167 = vrcp.f32 %v2006_v27  ;;  %v2012_v28 = vadd.f32 1.0, %v3146_v3  ;;  %v4104_v47 = vpop.f32.mrb[56].mxu0 }
 0x260   : > { %v3150_v29 = vpop.eup %3149  ;;  %3169 = vrcp.f32 %v2008_v8  ;;  %v2014_v9 = vadd.f32 1.0, %v3148_v18  ;;  %v4106_v25 = vpop.f32.mrb[41].mxu1  ;;  %v2684_v18 = vmul.f32 -1.442695, %v3972_v7 }
 0x261   : > { %v3152_v35 = vpop.eup %3151  ;;  %3171 = vrcp.f32 %v2012_v28  ;;  %v2013_v36 = vadd.f32 1.0, %v3150_v29  ;;  %v4110_v56 = vpop.f32.mrb[57].mxu0  ;;  %v2683_v29 = vmul.f32 -1.442695, %v3975_v13  ;;  %v2691_v13 = vmul.f32 -1.442695, %v3990_v38 }
 0x262   : > { %v3154_v39 = vpop.eup %3153  ;;  %2328 = vst [vmem:[%s3910_s20 + $0x158] sm:$0xff] %v3152_v35  ;;  %3173 = vrcp.f32 %v2014_v9  ;;  %v4112_v43 = vpop.f32.mrb[42].mxu1  ;;  %v2689_v35 = vmul.f32 -1.442695, %v3987_v32  ;;  %v2690_v32 = vmul.f32 -1.442695, %v3993_v46 }
 0x263   : > { %v3156_v55 = vpop.eup %3155  ;;  %2330 = vst [vmem:[%s3910_s20 + $0x168] sm:$0xff] %v3154_v39  ;;  %3175 = vrcp.f32 %v2013_v36  ;;  %v4116_v23 = vpop.f32.mrb[58].mxu0  ;;  %v4140_v39 = vrot.slane %v3851_v17, %v872_v54  ;;  %v2692_v17 = vmul.f32 -1.442695, %v3998_v48 }
 0x264   : > { %v3158_v63 = vpop.eup %3157  ;;  %2334 = vst [vmem:[%s3910_s20 + $0x188] sm:$0xff] %v3156_v55  ;;  %3177 = vpow2.f32 %v2671_v34  ;;  %v4118_v52 = vpop.f32.mrb[43].mxu1 }
 0x265   : > { %v3160_v27 = vpop.eup %3159  ;;  %2336 = vst [vmem:[%s3910_s20 + $0x198] sm:$0xff] %v3158_v63  ;;  %3179 = vpow2.f32 %v2675_v14  ;;  %v4122_v3 = vpop.f32.mrb[59].mxu0 }
 0x266   : > { %v3162_v8 = vpop.eup %3161  ;;  %2335 = vst [vmem:[%s3910_s20 + $0x190] sm:$0xff] %v3160_v27  ;;  %3181 = vpow2.f32 %v2677_v40  ;;  %v4133_v7 = vpop.f32.mrb[44].mxu1 }
 0x267   : > { %v3164_v28 = vpop.eup %3163  ;;  %2337 = vst [vmem:[%s3910_s20 + $0x1a0] sm:$0xff] %v3162_v8  ;;  %3183 = vpow2.f32 %v2676_v33  ;;  %v4135_v36 = vpop.f32.mrb[60].mxu0 }
 0x268   : > { %v3166_v9 = vpop.eup %3165  ;;  %2341 = vst [vmem:[%s3910_s20 + $0x1c0] sm:$0xff] %v3164_v28  ;;  %3185 = vpow2.f32 %v2678_v44  ;;  %v4142_v40 = vpop.f32.mrb[45].mxu1 }
 0x269   : > { %v3168_v34 = vpop.eup %3167  ;;  %2343 = vst [vmem:[%s3910_s20 + $0x1d0] sm:$0xff] %v3166_v9  ;;  %3187 = vpow2.f32 %v2682_v53  ;;  %v4144_v61 = vpop.f32.mrb[61].mxu0 }
 0x26a   : > { %v3170_v14 = vpop.eup %3169  ;;  %2342 = vst [vmem:[%s3910_s20 + $0x1c8] sm:$0xff] %v3168_v34  ;;  %3189 = vpow2.f32 %v2684_v18  ;;  %v1471_v33 = vpop.f32.mrb[46].mxu1 }
 0x26b   : > { %v3172_v55 = vpop.eup %3171  ;;  %2344 = vst [vmem:[%s3910_s20 + $0x1d8] sm:$0xff] %v3170_v14  ;;  %3191 = vpow2.f32 %v2683_v29  ;;  %v4148_v63 = vpop.f32.mrb[62].mxu0  ;;  %v4153_v38 = vadd.f32 %v1471_v33, %v4140_v39 }
 0x26c   : > { %v3174_v44 = vpop.eup %3173  ;;  %2348 = vst [vmem:[%s3910_s20 + $0x1f8] sm:$0xff] %v3172_v55  ;;  %3193 = vpow2.f32 %v2685_v6  ;;  %v4155_v27 = vpop.f32.mrb[47].mxu1 }
 0x26d   : > { %v4157_v53 = vpop.f32.mrb[63].mxu0  ;;  %v3176_v8 = vpop.eup %3175  ;;  %2350 = vst [vmem:[%s3910_s20 + $0x208] sm:$0xff] %v3174_v44  ;;  %3195 = vpow2.f32 %v2689_v35 }
 0x26e   : > { %v3178_v18 = vpop.eup %3177  ;;  %2349 = vst [vmem:[%s3910_s20 + $0x200] sm:$0xff] %v3176_v8  ;;  %3197 = vpow2.f32 %v2691_v13  ;;  %v1477_v6 = vpop.f32.mrb[48].mxu1 }
 0x26f   : > { %v3180_v46 = vpop.eup %3179  ;;  %v2015_v54 = vadd.f32 1.0, %v3178_v18  ;;  %3199 = vpow2.f32 %v2690_v32  ;;  %v4162_v55 = vadd.f32 %v1477_v6, %v4140_v39  ;;  %v4164_v35 = vpop.f32.mrb[49].mxu1 }
 0x270   : > { %v3182_v28 = vpop.eup %3181  ;;  %v2019_v29 = vadd.f32 1.0, %v3180_v46  ;;  %3201 = vpow2.f32 %v2692_v17  ;;  %v1481_v44 = vpop.f32.mrb[50].mxu1 }
 0x271   : > { %v3184_v48 = vpop.eup %3183  ;;  %3203 = vrcp.f32 %v2015_v54  ;;  %v2021_v9 = vadd.f32 1.0, %v3182_v28  ;;  %4456 = vst [vmem:[#allocation8_spill] sm:$0xff] %v4162_v55  ;;  %v4167_v17 = vadd.f32 %v1481_v44, %v4140_v39  ;;  %v4169_v18 = vpop.f32.mrb[51].mxu1 }
 0x272   : > { %v3186_v34 = vpop.eup %3185  ;;  %3205 = vrcp.f32 %v2019_v29  ;;  %v2020_v14 = vadd.f32 1.0, %v3184_v48 }
 0x273   : > { %v3188_v33 = vpop.eup %3187  ;;  %3207 = vrcp.f32 %v2021_v9  ;;  %v2022_v13 = vadd.f32 1.0, %v3186_v34  ;;  %4457 = vst [vmem:[#allocation9_spill] sm:$0xff] %v4167_v17  ;;  %v876_v9 = vsub.s32 5, %v3844_v12 }
 0x274   : > { %v3190_v32 = vpop.eup %3189  ;;  %3209 = vrcp.f32 %v2020_v14  ;;  %v2026_v8 = vadd.f32 1.0, %v3188_v33 }
 0x275   : > { %v3192_v46 = vpop.eup %3191  ;;  %3211 = vrcp.f32 %v2022_v13  ;;  %v2028_v54 = vadd.f32 1.0, %v3190_v32  ;;  %v2696_v32 = vmul.f32 -1.442695, %v4005_v1 }
 0x276   : > { %v3194_v28 = vpop.eup %3193  ;;  %3213 = vrcp.f32 %v2026_v8  ;;  %v2027_v29 = vadd.f32 1.0, %v3192_v46  ;;  %v1487_v17 = vpop.f32.mrb[52].mxu1 }
 0x277   : > { %v3196_v48 = vpop.eup %3195  ;;  %3215 = vrcp.f32 %v2028_v54  ;;  %v2029_v6 = vadd.f32 1.0, %v3194_v28  ;;  %v4174_v8 = vadd.f32 %v1487_v17, %v4140_v39  ;;  %v4176_v46 = vpop.f32.mrb[53].mxu1 }
 0x278   : > { %v3198_v34 = vpop.eup %3197  ;;  %3217 = vrcp.f32 %v2027_v29  ;;  %v2033_v14 = vadd.f32 1.0, %v3196_v48  ;;  %v2698_v29 = vmul.f32 -1.442695, %v4008_v4  ;;  %v4182_v48 = vld [vmem:[%s4444_s6] sm:$0xff]  ;;  %v1491_v1 = vpop.f32.mrb[54].mxu1 }
 0x279   : > { %v3200_v33 = vpop.eup %3199  ;;  %3219 = vrcp.f32 %v2029_v6  ;;  %v2035_v44 = vadd.f32 1.0, %v3198_v34  ;;  %v4185_v6 = vrot.slane %v4182_v48, %v876_v9  ;;  %v2697_v34 = vmul.f32 -1.442695, %v4011_v5  ;;  %v1493_v4 = vpop.f32.mrb[55].mxu1 }
 0x27a   : > { %v3202_v55 = vpop.eup %3201  ;;  %3221 = vrcp.f32 %v2033_v14  ;;  %v2034_v13 = vadd.f32 1.0, %v3200_v33  ;;  %v2699_v33 = vmul.f32 -1.442695, %v4017_v41  ;;  %v2703_v5 = vmul.f32 -1.442695, %v4026_v30 }
 0x27b   : > { %v3204_v54 = vpop.eup %3203  ;;  %3223 = vrcp.f32 %v2035_v44  ;;  %v2036_v28 = vadd.f32 1.0, %v3202_v55  ;;  %v4190_v55 = vadd.f32 %v1491_v1, %v4140_v39  ;;  %v4195_v9 = vadd.f32 %v1493_v4, %v4185_v6 }
 0x27c   : > { %v3206_v17 = vpop.eup %3205  ;;  %2351 = vst [vmem:[%s3910_s20 + $0x210] sm:$0xff] %v3204_v54  ;;  %3225 = vrcp.f32 %v2034_v13  ;;  %v2705_v54 = vmul.f32 -1.442695, %v4029_v31  ;;  %v2704_v41 = vmul.f32 -1.442695, %v4034_v37  ;;  %v1438_v31 = vadd.f32 %v4063_v21, %v4140_v39 }
 0x27d   : > { %v3208_v14 = vpop.eup %3207  ;;  %2355 = vst [vmem:[%s3910_s20 + $0x230] sm:$0xff] %v3206_v17  ;;  %3227 = vrcp.f32 %v2036_v28  ;;  %v2706_v17 = vmul.f32 -1.442695, %v4037_v16  ;;  %v2710_v30 = vmul.f32 -1.442695, %v4043_v51 }
 0x27e   : > { %v3210_v44 = vpop.eup %3209  ;;  %2357 = vst [vmem:[%s3910_s20 + $0x240] sm:$0xff] %v3208_v14  ;;  %3229 = vpow2.f32 %v2696_v32  ;;  %v1497_v32 = vpop.f32.mrb[56].mxu1  ;;  %v2712_v16 = vmul.f32 -1.442695, %v4049_v59  ;;  %v2711_v51 = vmul.f32 -1.442695, %v4055_v19 }
 0x27f   : > { %v3212_v13 = vpop.eup %3211  ;;  %2356 = vst [vmem:[%s3910_s20 + $0x238] sm:$0xff] %v3210_v44  ;;  %3231 = vpow2.f32 %v2698_v29  ;;  %v4210_v29 = vadd.f32 %v1497_v32, %v4140_v39  ;;  %v1499_v37 = vpop.f32.mrb[57].mxu1  ;;  %v2713_v59 = vmul.f32 -1.442695, %v4058_v62  ;;  %v880_v32 = vsub.s32 6, %v3844_v12 }
 0x280   : > { %v3214_v1 = vpop.eup %3213  ;;  %2358 = vst [vmem:[%s3910_s20 + $0x248] sm:$0xff] %v3212_v13  ;;  %3233 = vpow2.f32 %v2697_v34  ;;  %v4215_v14 = vadd.f32 %v1499_v37, %v4185_v6 }
 0x281   : > { %v3216_v28 = vpop.eup %3215  ;;  %2362 = vst [vmem:[%s3910_s20 + $0x268] sm:$0xff] %v3214_v1  ;;  %3235 = vpow2.f32 %v2699_v33  ;;  %v1501_v33 = vpop.f32.mrb[58].mxu1 }
 0x282   : > { %v3218_v4 = vpop.eup %3217  ;;  %2364 = vst [vmem:[%s3910_s20 + $0x278] sm:$0xff] %v3216_v28  ;;  %3237 = vpow2.f32 %v2703_v5  ;;  %v4220_v21 = vadd.f32 %v1501_v33, %v4140_v39  ;;  %v1503_v5 = vpop.f32.mrb[59].mxu1  ;;  %v2609_v28 = vmul.f32 -1.442695, %v1438_v31 }
 0x283   : > { %v3220_v34 = vpop.eup %3219  ;;  %2363 = vst [vmem:[%s3910_s20 + $0x270] sm:$0xff] %v3218_v4  ;;  %3239 = vpow2.f32 %v2705_v54  ;;  %v4225_v54 = vadd.f32 %v1503_v5, %v4185_v6 }
 0x284   : > { %v3222_v44 = vpop.eup %3221  ;;  %2365 = vst [vmem:[%s3910_s20 + $0x280] sm:$0xff] %v3220_v34  ;;  %3241 = vpow2.f32 %v2704_v41 }
 0x285   : > { %v3224_v13 = vpop.eup %3223  ;;  %2369 = vst [vmem:[%s3910_s20 + $0x2a0] sm:$0xff] %v3222_v44  ;;  %3243 = vpow2.f32 %v2706_v17 }
 0x286   : > { %v3226_v1 = vpop.eup %3225  ;;  %2371 = vst [vmem:[%s3910_s20 + $0x2b0] sm:$0xff] %v3224_v13  ;;  %3245 = vpow2.f32 %v2710_v30  ;;  %v1507_v17 = vpop.f32.mrb[60].mxu1  ;;  %v4238_v13 = vrot.slane %v4182_v48, %v880_v32 }
 0x287   : > { %v3228_v41 = vpop.eup %3227  ;;  %2370 = vst [vmem:[%s3910_s20 + $0x2a8] sm:$0xff] %v3226_v1  ;;  %3247 = vpow2.f32 %v2712_v16  ;;  %v4232_v33 = vadd.f32 %v1507_v17, %v4140_v39  ;;  %v1509_v30 = vpop.f32.mrb[61].mxu1 }
 0x288   : > { %v3230_v19 = vpop.eup %3229  ;;  %2372 = vst [vmem:[%s3910_s20 + $0x2b8] sm:$0xff] %v3228_v41  ;;  %3249 = vpow2.f32 %v2711_v51  ;;  %v4235_v16 = vadd.f32 %v1509_v30, %v4185_v6  ;;  %v1511_v51 = vpop.f32.mrb[62].mxu1  ;;  %v1559_v32 = vadd.f32 %v4065_v2, %v4238_v13 }
 0x289   : > { %v3232_v4 = vpop.eup %3231  ;;  %v2040_v37 = vadd.f32 1.0, %v3230_v19  ;;  %3251 = vpow2.f32 %v2713_v59  ;;  %v4241_v59 = vadd.f32 %v1511_v51, %v4140_v39  ;;  %v1513_v1 = vpop.f32.mrb[63].mxu1 }
 0x28a   : > { %v3234_v62 = vpop.eup %3233  ;;  %v2042_v34 = vadd.f32 1.0, %v3232_v4  ;;  %3253 = vpow2.f32 %v2609_v28  ;;  %v4244_v19 = vadd.f32 %v1513_v1, %v4185_v6 }
 0x28b   : > { %v3236_v31 = vpop.eup %3235  ;;  %3255 = vrcp.f32 %v2040_v37  ;;  %v2041_v44 = vadd.f32 1.0, %v3234_v62 }
 0x28c   : > { %v3238_v5 = vpop.eup %3237  ;;  %3257 = vrcp.f32 %v2042_v34  ;;  %v2043_v12 = vadd.f32 1.0, %v3236_v31 }
 0x28d   : > { %v3240_v28 = vpop.eup %3239  ;;  %3259 = vrcp.f32 %v2041_v44  ;;  %v2047_v41 = vadd.f32 1.0, %v3238_v5  ;;  %v1440_v44 = vadd.f32 %v4068_v57, %v4185_v6  ;;  %v1562_v57 = vadd.f32 %v4075_v15, %v4238_v13 }
 0x28e   : > { %v3242_v4 = vpop.eup %3241  ;;  %3261 = vrcp.f32 %v2043_v12  ;;  %v2049_v37 = vadd.f32 1.0, %v3240_v28  ;;  %v1551_v12 = vadd.f32 %v4070_v11, %v4238_v13 }
 0x28f   : > { %v3244_v17 = vpop.eup %3243  ;;  %3263 = vrcp.f32 %v2047_v41  ;;  %v2048_v62 = vadd.f32 1.0, %v3242_v4  ;;  %v1442_v41 = vadd.f32 %v4073_v45, %v4140_v39  ;;  %v2610_v11 = vmul.f32 -1.442695, %v1440_v44 }
 0x290   : > { %v3246_v34 = vpop.eup %3245  ;;  %3265 = vrcp.f32 %v2049_v37  ;;  %v2050_v48 = vadd.f32 1.0, %v3244_v17  ;;  %v2625_v37 = vmul.f32 -1.442695, %v1559_v32  ;;  %v2611_v45 = vmul.f32 -1.442695, %v1551_v12 }
 0x291   : > { %v3248_v30 = vpop.eup %3247  ;;  %3267 = vrcp.f32 %v2048_v62  ;;  %v2054_v31 = vadd.f32 1.0, %v3246_v34  ;;  %v1444_v34 = vadd.f32 %v4078_v24, %v4185_v6  ;;  %v2616_v15 = vmul.f32 -1.442695, %v1442_v41 }
 0x292   : > { %v3250_v51 = vpop.eup %3249  ;;  %3269 = vrcp.f32 %v2050_v48  ;;  %v2056_v5 = vadd.f32 1.0, %v3248_v30  ;;  %v1554_v30 = vadd.f32 %v4080_v26, %v4238_v13  ;;  %v2632_v24 = vmul.f32 -1.442695, %v1562_v57 }
 0x293   : > { %v3252_v1 = vpop.eup %3251  ;;  %3271 = vrcp.f32 %v2054_v31  ;;  %v2055_v28 = vadd.f32 1.0, %v3250_v51  ;;  %v1448_v31 = vadd.f32 %v4082_v42, %v4140_v39  ;;  %v1575_v51 = vadd.f32 %v4084_v49, %v4238_v13 }
 0x294   : > { %v3254_v2 = vpop.eup %3253  ;;  %3273 = vrcp.f32 %v2056_v5  ;;  %v2057_v4 = vadd.f32 1.0, %v3252_v1  ;;  %v2617_v26 = vmul.f32 -1.442695, %v1444_v34  ;;  %v1450_v12 = vadd.f32 %v4086_v50, %v4185_v6 }
 0x295   : > { %v3256_v17 = vpop.eup %3255  ;;  %3275 = vrcp.f32 %v2055_v28  ;;  %v1953_v62 = vadd.f32 1.0, %v3254_v2  ;;  %v2618_v42 = vmul.f32 -1.442695, %v1554_v30  ;;  %v1567_v28 = vadd.f32 %v4088_v60, %v4238_v13 }
 0x296   : > { %v3258_v48 = vpop.eup %3257  ;;  %2376 = vst [vmem:[%s3910_s20 + $0x2d8] sm:$0xff] %v3256_v17  ;;  %3277 = vrcp.f32 %v2057_v4  ;;  %v2623_v49 = vmul.f32 -1.442695, %v1448_v31  ;;  %v1452_v2 = vadd.f32 %v4090_v20, %v4140_v39  ;;  %v2653_v50 = vmul.f32 -1.442695, %v1575_v51 }
 0x297   : > { %v3260_v32 = vpop.eup %3259  ;;  %2378 = vst [vmem:[%s3910_s20 + $0x2e8] sm:$0xff] %v3258_v48  ;;  %3279 = vrcp.f32 %v1953_v62  ;;  %v2624_v60 = vmul.f32 -1.442695, %v1450_v12  ;;  %v2639_v62 = vmul.f32 -1.442695, %v1567_v28 }
 0x298   : > { %v3262_v44 = vpop.eup %3261  ;;  %2377 = vst [vmem:[%s3910_s20 + $0x2e0] sm:$0xff] %v3260_v32  ;;  %3281 = vpow2.f32 %v2625_v37  ;;  %v1578_v37 = vadd.f32 %v4092_v58, %v4238_v13  ;;  %v2630_v20 = vmul.f32 -1.442695, %v1452_v2 }
 0x299   : > { %v3264_v5 = vpop.eup %3263  ;;  %2379 = vst [vmem:[%s3910_s20 + $0x2f0] sm:$0xff] %v3262_v44  ;;  %3283 = vpow2.f32 %v2610_v11 }
 0x29a   : > { %v3266_v1 = vpop.eup %3265  ;;  %2383 = vst [vmem:[%s3910_s20 + $0x310] sm:$0xff] %v3264_v5  ;;  %3285 = vpow2.f32 %v2611_v45  ;;  %v2660_v48 = vmul.f32 -1.442695, %v1578_v37 }
 0x29b   : > { %v3268_v41 = vpop.eup %3267  ;;  %2385 = vst [vmem:[%s3910_s20 + $0x320] sm:$0xff] %v3266_v1  ;;  %3287 = vpow2.f32 %v2616_v15 }
 0x29c   : > { %v3270_v4 = vpop.eup %3269  ;;  %2384 = vst [vmem:[%s3910_s20 + $0x318] sm:$0xff] %v3268_v41  ;;  %3289 = vpow2.f32 %v2632_v24 }
 0x29d   : > { %v3272_v57 = vpop.eup %3271  ;;  %2386 = vst [vmem:[%s3910_s20 + $0x328] sm:$0xff] %v3270_v4  ;;  %3291 = vpow2.f32 %v2617_v26  ;;  %v1454_v4 = vadd.f32 %v4094_v0, %v4185_v6 }
 0x29e   : > { %v3274_v17 = vpop.eup %3273  ;;  %2390 = vst [vmem:[%s3910_s20 + $0x348] sm:$0xff] %v3272_v57  ;;  %3293 = vpow2.f32 %v2618_v42  ;;  %v1570_v57 = vadd.f32 %v4096_v22, %v4238_v13  ;;  %v1460_v22 = vadd.f32 %v4106_v25, %v4185_v6 }
 0x29f   : > { %v3276_v11 = vpop.eup %3275  ;;  %2392 = vst [vmem:[%s3910_s20 + $0x358] sm:$0xff] %v3274_v17  ;;  %3295 = vpow2.f32 %v2623_v49 }
 0x2a0   : > { %v3278_v34 = vpop.eup %3277  ;;  %2391 = vst [vmem:[%s3910_s20 + $0x350] sm:$0xff] %v3276_v11  ;;  %3297 = vpow2.f32 %v2653_v50 }
 0x2a1   : > { %v3280_v45 = vpop.eup %3279  ;;  %2393 = vst [vmem:[%s3910_s20 + $0x360] sm:$0xff] %v3278_v34  ;;  %3299 = vpow2.f32 %v2624_v60  ;;  %v1591_v34 = vadd.f32 %v4104_v47, %v4238_v13 }
 0x2a2   : > { %v3282_v58 = vpop.eup %3281  ;;  %2289 = vst [vmem:[%s3910_s20 + $0x20] sm:$0xff] %v3280_v45  ;;  %3301 = vpow2.f32 %v2639_v62  ;;  %v1458_v62 = vadd.f32 %v4100_v10, %v4140_v39  ;;  %v2631_v45 = vmul.f32 -1.442695, %v1454_v4  ;;  %v2646_v10 = vmul.f32 -1.442695, %v1570_v57 }
 0x2a3   : > { %v3284_v30 = vpop.eup %3283  ;;  %v1969_v32 = vadd.f32 1.0, %v3282_v58  ;;  %3303 = vpow2.f32 %v2630_v20  ;;  %v2681_v25 = vmul.f32 -1.442695, %v1591_v34 }
 0x2a4   : > { %v3286_v15 = vpop.eup %3285  ;;  %v1954_v31 = vadd.f32 1.0, %v3284_v30  ;;  %3305 = vpow2.f32 %v2660_v48  ;;  %v2637_v47 = vmul.f32 -1.442695, %v1458_v62 }
 0x2a5   : > { %v3288_v44 = vpop.eup %3287  ;;  %3307 = vrcp.f32 %v1969_v32  ;;  %v1955_v24 = vadd.f32 1.0, %v3286_v15  ;;  %v1583_v32 = vadd.f32 %v4110_v56, %v4238_v13  ;;  %v2638_v56 = vmul.f32 -1.442695, %v1460_v22 }
 0x2a6   : > { %v3290_v51 = vpop.eup %3289  ;;  %3309 = vrcp.f32 %v1954_v31  ;;  %v1960_v5 = vadd.f32 1.0, %v3288_v44  ;;  %v1462_v31 = vadd.f32 %v4112_v43, %v4140_v39 }
 0x2a7   : > { %v3292_v26 = vpop.eup %3291  ;;  %3311 = vrcp.f32 %v1955_v24  ;;  %v1976_v12 = vadd.f32 1.0, %v3290_v51  ;;  %v1594_v24 = vadd.f32 %v4116_v23, %v4238_v13  ;;  %v2667_v43 = vmul.f32 -1.442695, %v1583_v32 }
 0x2a8   : > { %v3294_v1 = vpop.eup %3293  ;;  %3313 = vrcp.f32 %v1960_v5  ;;  %v1961_v42 = vadd.f32 1.0, %v3292_v26  ;;  %v1464_v5 = vadd.f32 %v4118_v52, %v4185_v6  ;;  %v2644_v23 = vmul.f32 -1.442695, %v1462_v31 }
 0x2a9   : > { %v3296_v28 = vpop.eup %3295  ;;  %3315 = vrcp.f32 %v1976_v12  ;;  %v1962_v41 = vadd.f32 1.0, %v3294_v1  ;;  %v1586_v12 = vadd.f32 %v4122_v3, %v4238_v13  ;;  %v2688_v52 = vmul.f32 -1.442695, %v1594_v24 }
 0x2aa   : > { %v3298_v49 = vpop.eup %3297  ;;  %3317 = vrcp.f32 %v1961_v42  ;;  %v1967_v2 = vadd.f32 1.0, %v3296_v28  ;;  %v1468_v42 = vadd.f32 %v4133_v7, %v4140_v39  ;;  %v2645_v3 = vmul.f32 -1.442695, %v1464_v5 }
 0x2ab   : > { %v3300_v50 = vpop.eup %3299  ;;  %3319 = vrcp.f32 %v1962_v41  ;;  %v1997_v37 = vadd.f32 1.0, %v3298_v49  ;;  %v1607_v41 = vadd.f32 %v4135_v36, %v4238_v13  ;;  %v2674_v7 = vmul.f32 -1.442695, %v1586_v12 }
 0x2ac   : > { %v3302_v60 = vpop.eup %3301  ;;  %3321 = vrcp.f32 %v1967_v2  ;;  %v1968_v17 = vadd.f32 1.0, %v3300_v50  ;;  %v1470_v2 = vadd.f32 %v4142_v40, %v4185_v6  ;;  %v2651_v50 = vmul.f32 -1.442695, %v1468_v42 }
 0x2ad   : > { %v3304_v11 = vpop.eup %3303  ;;  %3323 = vrcp.f32 %v1997_v37  ;;  %v1983_v20 = vadd.f32 1.0, %v3302_v60  ;;  %v2709_v36 = vmul.f32 -1.442695, %v1607_v41 }
 0x2ae   : > { %v3306_v0 = vpop.eup %3305  ;;  %3325 = vrcp.f32 %v1968_v17  ;;  %v1974_v48 = vadd.f32 1.0, %v3304_v11  ;;  %v2652_v60 = vmul.f32 -1.442695, %v1470_v2 }
 0x2af   : > { %v3308_v58 = vpop.eup %3307  ;;  %3327 = vrcp.f32 %v1983_v20  ;;  %v2004_v30 = vadd.f32 1.0, %v3306_v0 }
 0x2b0   : > { %v3310_v15 = vpop.eup %3309  ;;  %2305 = vst [vmem:[%s3910_s20 + $0xa0] sm:$0xff] %v3308_v58  ;;  %3329 = vrcp.f32 %v1974_v48 }
 0x2b1   : > { %v3312_v44 = vpop.eup %3311  ;;  %2290 = vst [vmem:[%s3910_s20 + $0x28] sm:$0xff] %v3310_v15  ;;  %3331 = vrcp.f32 %v2004_v30 }
 0x2b2   : > { %v3314_v51 = vpop.eup %3313  ;;  %2291 = vst [vmem:[%s3910_s20 + $0x30] sm:$0xff] %v3312_v44  ;;  %3333 = vpow2.f32 %v2631_v45 }
 0x2b3   : > { %v3316_v26 = vpop.eup %3315  ;;  %2296 = vst [vmem:[%s3910_s20 + $0x58] sm:$0xff] %v3314_v51  ;;  %3335 = vpow2.f32 %v2646_v10 }
 0x2b4   : > { %v3318_v1 = vpop.eup %3317  ;;  %2312 = vst [vmem:[%s3910_s20 + $0xd8] sm:$0xff] %v3316_v26  ;;  %3337 = vpow2.f32 %v2637_v47  ;;  %v1610_v26 = vadd.f32 %v4148_v63, %v4238_v13  ;;  %v2658_v63 = vmul.f32 -1.442695, %v4153_v38  ;;  %v1484_v38 = vadd.f32 %v4169_v18, %v4185_v6 }
 0x2b5   : > { %v3320_v28 = vpop.eup %3319  ;;  %2297 = vst [vmem:[%s3910_s20 + $0x60] sm:$0xff] %v3318_v1  ;;  %3339 = vpow2.f32 %v2681_v25  ;;  %v1599_v25 = vadd.f32 %v4144_v61, %v4238_v13  ;;  %v1474_v1 = vadd.f32 %v4155_v27, %v4185_v6  ;;  %v1480_v27 = vadd.f32 %v4164_v35, %v4185_v6 }
 0x2b6   : > { %v3322_v49 = vpop.eup %3321  ;;  %2298 = vst [vmem:[%s3910_s20 + $0x68] sm:$0xff] %v3320_v28  ;;  %3341 = vpow2.f32 %v2638_v56  ;;  %v1602_v28 = vadd.f32 %v4157_v53, %v4238_v13 }
 0x2b7   : > { %v3324_v4 = vpop.eup %3323  ;;  %2303 = vst [vmem:[%s3910_s20 + $0x90] sm:$0xff] %v3322_v49  ;;  %3343 = vpow2.f32 %v2667_v43  ;;  %v2695_v42 = vmul.f32 -1.442695, %v1599_v25 }
 0x2b8   : > { %v3326_v39 = vpop.eup %3325  ;;  %2333 = vst [vmem:[%s3910_s20 + $0x180] sm:$0xff] %v3324_v4  ;;  %3345 = vpow2.f32 %v2644_v23  ;;  %v2659_v4 = vmul.f32 -1.442695, %v1474_v1  ;;  %v2702_v13 = vmul.f32 -1.442695, %v1602_v28 }
 0x2b9   : > { %v3328_v37 = vpop.eup %3327  ;;  %2304 = vst [vmem:[%s3910_s20 + $0x98] sm:$0xff] %v3326_v39  ;;  %3347 = vpow2.f32 %v2688_v52  ;;  %v4458_v39 = vld [vmem:[#allocation8_spill] sm:$0xff] }
 0x2ba   : > { %v3330_v57 = vpop.eup %3329  ;;  %2319 = vst [vmem:[%s3910_s20 + $0x110] sm:$0xff] %v3328_v37  ;;  %3349 = vpow2.f32 %v2645_v3  ;;  %v2716_v3 = vmul.f32 -1.442695, %v1610_v26  ;;  %v2666_v37 = vmul.f32 -1.442695, %v1480_v27 }
 0x2bb   : > { %v3332_v17 = vpop.eup %3331  ;;  %2310 = vst [vmem:[%s3910_s20 + $0xc8] sm:$0xff] %v3330_v57  ;;  %3351 = vpow2.f32 %v2674_v7  ;;  %v2700_v27 = vmul.f32 -1.442695, %v4220_v21 }
 0x2bc   : > { %v3334_v40 = vpop.eup %3333  ;;  %2340 = vst [vmem:[%s3910_s20 + $0x1b8] sm:$0xff] %v3332_v17  ;;  %3353 = vpow2.f32 %v2651_v50  ;;  %v2665_v50 = vmul.f32 -1.442695, %v4458_v39 }
 0x2bd   : > { %v3336_v62 = vpop.eup %3335  ;;  %v1975_v11 = vadd.f32 1.0, %v3334_v40  ;;  %3355 = vpow2.f32 %v2709_v36  ;;  %v1490_v36 = vadd.f32 %v4176_v46, %v4185_v6  ;;  %v2673_v40 = vmul.f32 -1.442695, %v1484_v38 }
 0x2be   : > { %v3338_v20 = vpop.eup %3337  ;;  %v1990_v34 = vadd.f32 1.0, %v3336_v62  ;;  %3357 = vpow2.f32 %v2652_v60  ;;  %v4459_v60 = vld [vmem:[#allocation9_spill] sm:$0xff]  ;;  %v2714_v38 = vmul.f32 -1.442695, %v4241_v59 }
 0x2bf   : > { %v3340_v0 = vpop.eup %3339  ;;  %3359 = vrcp.f32 %v1975_v11  ;;  %v1981_v48 = vadd.f32 1.0, %v3338_v20  ;;  %v2672_v18 = vmul.f32 -1.442695, %v4459_v60  ;;  %v2679_v11 = vmul.f32 -1.442695, %v4174_v8 }
 0x2c0   : > { %v3342_v45 = vpop.eup %3341  ;;  %3361 = vrcp.f32 %v1990_v34  ;;  %v2025_v22 = vadd.f32 1.0, %v3340_v0  ;;  %v2680_v46 = vmul.f32 -1.442695, %v1490_v36  ;;  %v2686_v34 = vmul.f32 -1.442695, %v4190_v55 }
 0x2c1   : > { %v3344_v58 = vpop.eup %3343  ;;  %3363 = vrcp.f32 %v1981_v48  ;;  %v1982_v30 = vadd.f32 1.0, %v3342_v45  ;;  %v2687_v48 = vmul.f32 -1.442695, %v4195_v9 }
 0x2c2   : > { %v3346_v10 = vpop.eup %3345  ;;  %3365 = vrcp.f32 %v2025_v22  ;;  %v2011_v32 = vadd.f32 1.0, %v3344_v58 }
 0x2c3   : > { %v3348_v15 = vpop.eup %3347  ;;  %3367 = vrcp.f32 %v1982_v30  ;;  %v1988_v47 = vadd.f32 1.0, %v3346_v10 }
 0x2c4   : > { %v3350_v31 = vpop.eup %3349  ;;  %3369 = vrcp.f32 %v2011_v32  ;;  %v2032_v44 = vadd.f32 1.0, %v3348_v15 }
 0x2c5   : > { %v3352_v24 = vpop.eup %3351  ;;  %3371 = vrcp.f32 %v1988_v47  ;;  %v1989_v51 = vadd.f32 1.0, %v3350_v31 }
 0x2c6   : > { %v3354_v56 = vpop.eup %3353  ;;  %3373 = vrcp.f32 %v2032_v44  ;;  %v2018_v5 = vadd.f32 1.0, %v3352_v24 }
 0x2c7   : > { %v3356_v43 = vpop.eup %3355  ;;  %3375 = vrcp.f32 %v1989_v51  ;;  %v1995_v12 = vadd.f32 1.0, %v3354_v56 }
 0x2c8   : > { %v3358_v23 = vpop.eup %3357  ;;  %3377 = vrcp.f32 %v2018_v5  ;;  %v2053_v61 = vadd.f32 1.0, %v3356_v43 }
 0x2c9   : > { %v3360_v52 = vpop.eup %3359  ;;  %3379 = vrcp.f32 %v1995_v12  ;;  %v1996_v41 = vadd.f32 1.0, %v3358_v23 }
 0x2ca   : > { %v3362_v49 = vpop.eup %3361  ;;  %2311 = vst [vmem:[%s3910_s20 + $0xd0] sm:$0xff] %v3360_v52  ;;  %3381 = vrcp.f32 %v2053_v61  ;;  %v2693_v52 = vmul.f32 -1.442695, %v4210_v29  ;;  %v2707_v29 = vmul.f32 -1.442695, %v4232_v33 }
 0x2cb   : > { %v3364_v2 = vpop.eup %3363  ;;  %2326 = vst [vmem:[%s3910_s20 + $0x148] sm:$0xff] %v3362_v49  ;;  %3383 = vrcp.f32 %v1996_v41  ;;  %v2694_v49 = vmul.f32 -1.442695, %v4215_v14  ;;  %v2708_v14 = vmul.f32 -1.442695, %v4235_v16 }
 0x2cc   : > { %v3366_v53 = vpop.eup %3365  ;;  %2317 = vst [vmem:[%s3910_s20 + $0x100] sm:$0xff] %v3364_v2  ;;  %3385 = vpow2.f32 %v2695_v42 }
 0x2cd   : > { %v3368_v7 = vpop.eup %3367  ;;  %2361 = vst [vmem:[%s3910_s20 + $0x260] sm:$0xff] %v3366_v53  ;;  %3387 = vpow2.f32 %v2658_v63 }
 0x2ce   : > { %v3370_v35 = vpop.eup %3369  ;;  %2318 = vst [vmem:[%s3910_s20 + $0x108] sm:$0xff] %v3368_v7  ;;  %3389 = vpow2.f32 %v2716_v3  ;;  %v2715_v7 = vmul.f32 -1.442695, %v4244_v19 }
 0x2cf   : > { %v3372_v57 = vpop.eup %3371  ;;  %2347 = vst [vmem:[%s3910_s20 + $0x1f0] sm:$0xff] %v3370_v35  ;;  %3391 = vpow2.f32 %v2659_v4  ;;  %v2701_v4 = vmul.f32 -1.442695, %v4225_v54 }
 0x2d0   : > { %v3374_v17 = vpop.eup %3373  ;;  %2324 = vst [vmem:[%s3910_s20 + $0x138] sm:$0xff] %v3372_v57  ;;  %3393 = vpow2.f32 %v2702_v13 }
 0x2d1   : > { %v3376_v62 = vpop.eup %3375  ;;  %2368 = vst [vmem:[%s3910_s20 + $0x298] sm:$0xff] %v3374_v17  ;;  %3395 = vpow2.f32 %v2665_v50 }
 0x2d2   : > { %v3378_v20 = vpop.eup %3377  ;;  %2325 = vst [vmem:[%s3910_s20 + $0x140] sm:$0xff] %v3376_v62  ;;  %3397 = vpow2.f32 %v2666_v37 }
 0x2d3   : > { %v3380_v6 = vpop.eup %3379  ;;  %2354 = vst [vmem:[%s3910_s20 + $0x228] sm:$0xff] %v3378_v20  ;;  %3399 = vpow2.f32 %v2672_v18 }
 0x2d4   : > { %v3382_v0 = vpop.eup %3381  ;;  %2331 = vst [vmem:[%s3910_s20 + $0x170] sm:$0xff] %v3380_v6  ;;  %3401 = vpow2.f32 %v2673_v40 }
 0x2d5   : > { %v3384_v45 = vpop.eup %3383  ;;  %2389 = vst [vmem:[%s3910_s20 + $0x340] sm:$0xff] %v3382_v0  ;;  %3403 = vpow2.f32 %v2679_v11 }
 0x2d6   : > { %v3386_v22 = vpop.eup %3385  ;;  %2332 = vst [vmem:[%s3910_s20 + $0x178] sm:$0xff] %v3384_v45  ;;  %3405 = vpow2.f32 %v2680_v46 }
 0x2d7   : > { %v3388_v8 = vpop.eup %3387  ;;  %v2039_v58 = vadd.f32 1.0, %v3386_v22  ;;  %3407 = vpow2.f32 %v2686_v34 }
 0x2d8   : > { %v3390_v30 = vpop.eup %3389  ;;  %v2002_v10 = vadd.f32 1.0, %v3388_v8  ;;  %3409 = vpow2.f32 %v2687_v48 }
 0x2d9   : > { %v3392_v32 = vpop.eup %3391  ;;  %3411 = vrcp.f32 %v2039_v58  ;;  %v2060_v55 = vadd.f32 1.0, %v3390_v30 }
 0x2da   : > { %v3394_v15 = vpop.eup %3393  ;;  %3413 = vrcp.f32 %v2002_v10  ;;  %v2003_v47 = vadd.f32 1.0, %v3392_v32 }
 0x2db   : > { %v3396_v31 = vpop.eup %3395  ;;  %3415 = vrcp.f32 %v2060_v55  ;;  %v2046_v9 = vadd.f32 1.0, %v3394_v15 }
 0x2dc   : > { %v3398_v44 = vpop.eup %3397  ;;  %3417 = vrcp.f32 %v2003_v47  ;;  %v2009_v25 = vadd.f32 1.0, %v3396_v31 }
 0x2dd   : > { %v3400_v24 = vpop.eup %3399  ;;  %3419 = vrcp.f32 %v2046_v9  ;;  %v2010_v51 = vadd.f32 1.0, %v3398_v44 }
 0x2de   : > { %v3402_v56 = vpop.eup %3401  ;;  %3421 = vrcp.f32 %v2009_v25  ;;  %v2016_v5 = vadd.f32 1.0, %v3400_v24 }
 0x2df   : > { %v3404_v26 = vpop.eup %3403  ;;  %3423 = vrcp.f32 %v2010_v51  ;;  %v2017_v43 = vadd.f32 1.0, %v3402_v56 }
 0x2e0   : > { %v3406_v12 = vpop.eup %3405  ;;  %3425 = vrcp.f32 %v2016_v5  ;;  %v2023_v1 = vadd.f32 1.0, %v3404_v26 }
 0x2e1   : > { %v3408_v23 = vpop.eup %3407  ;;  %3427 = vrcp.f32 %v2017_v43  ;;  %v2024_v61 = vadd.f32 1.0, %v3406_v12 }
 0x2e2   : > { %v3410_v42 = vpop.eup %3409  ;;  %3429 = vrcp.f32 %v2023_v1  ;;  %v2030_v28 = vadd.f32 1.0, %v3408_v23 }
 0x2e3   : > { %v3412_v41 = vpop.eup %3411  ;;  %3431 = vrcp.f32 %v2024_v61  ;;  %v2031_v63 = vadd.f32 1.0, %v3410_v42 }
 0x2e4   : > { %v3414_v3 = vpop.eup %3413  ;;  %2375 = vst [vmem:[%s3910_s20 + $0x2d0] sm:$0xff] %v3412_v41  ;;  %3433 = vrcp.f32 %v2030_v28 }
 0x2e5   : > { %v3416_v2 = vpop.eup %3415  ;;  %2338 = vst [vmem:[%s3910_s20 + $0x1a8] sm:$0xff] %v3414_v3  ;;  %3435 = vrcp.f32 %v2031_v63 }
 0x2e6   : > { %v3418_v53 = vpop.eup %3417  ;;  %2396 = vst [vmem:[%s3910_s20 + $0x378] sm:$0xff] %v3416_v2  ;;  %3437 = vpow2.f32 %v2693_v52 }
 0x2e7   : > { %v3420_v13 = vpop.eup %3419  ;;  %2339 = vst [vmem:[%s3910_s20 + $0x1b0] sm:$0xff] %v3418_v53  ;;  %3439 = vpow2.f32 %v2694_v49 }
 0x2e8   : > { %v3422_v21 = vpop.eup %3421  ;;  %2382 = vst [vmem:[%s3910_s20 + $0x308] sm:$0xff] %v3420_v13  ;;  %3441 = vpow2.f32 %v2700_v27 }
 0x2e9   : > { %v3424_v54 = vpop.eup %3423  ;;  %2345 = vst [vmem:[%s3910_s20 + $0x1e0] sm:$0xff] %v3422_v21  ;;  %3443 = vpow2.f32 %v2701_v4 }
 0x2ea   : > { %v3426_v33 = vpop.eup %3425  ;;  %2346 = vst [vmem:[%s3910_s20 + $0x1e8] sm:$0xff] %v3424_v54  ;;  %3445 = vpow2.f32 %v2707_v29 }
 0x2eb   : > { %v3428_v39 = vpop.eup %3427  ;;  %2352 = vst [vmem:[%s3910_s20 + $0x218] sm:$0xff] %v3426_v33  ;;  %3447 = vpow2.f32 %v2708_v14 }
 0x2ec   : > { %v3430_v16 = vpop.eup %3429  ;;  %2353 = vst [vmem:[%s3910_s20 + $0x220] sm:$0xff] %v3428_v39  ;;  %3449 = vpow2.f32 %v2714_v38 }
 0x2ed   : > { %v3432_v50 = vpop.eup %3431  ;;  %2359 = vst [vmem:[%s3910_s20 + $0x250] sm:$0xff] %v3430_v16  ;;  %3451 = vpow2.f32 %v2715_v7 }
 0x2ee   : > { %v3434_v59 = vpop.eup %3433  ;;  %2360 = vst [vmem:[%s3910_s20 + $0x258] sm:$0xff] %v3432_v50 }
 0x2ef   : > { %v3436_v35 = vpop.eup %3435  ;;  %2366 = vst [vmem:[%s3910_s20 + $0x288] sm:$0xff] %v3434_v59 }
 0x2f0   : > { %v3438_v37 = vpop.eup %3437  ;;  %2367 = vst [vmem:[%s3910_s20 + $0x290] sm:$0xff] %v3436_v35 }
 0x2f1   : > { %v3440_v19 = vpop.eup %3439  ;;  %v2037_v36 = vadd.f32 1.0, %v3438_v37 }
 0x2f2   : > { %v3442_v57 = vpop.eup %3441  ;;  %v2038_v60 = vadd.f32 1.0, %v3440_v19 }
 0x2f3   : > { %v3444_v18 = vpop.eup %3443  ;;  %3453 = vrcp.f32 %v2037_v36  ;;  %v2044_v17 = vadd.f32 1.0, %v3442_v57 }
 0x2f4   : > { %v3446_v40 = vpop.eup %3445  ;;  %3455 = vrcp.f32 %v2038_v60  ;;  %v2045_v62 = vadd.f32 1.0, %v3444_v18 }
 0x2f5   : > { %v3448_v11 = vpop.eup %3447  ;;  %3457 = vrcp.f32 %v2044_v17  ;;  %v2051_v20 = vadd.f32 1.0, %v3446_v40 }
 0x2f6   : > { %v3450_v46 = vpop.eup %3449  ;;  %3459 = vrcp.f32 %v2045_v62  ;;  %v2052_v6 = vadd.f32 1.0, %v3448_v11 }
 0x2f7   : > { %v3452_v34 = vpop.eup %3451  ;;  %3461 = vrcp.f32 %v2051_v20  ;;  %v2058_v0 = vadd.f32 1.0, %v3450_v46 }
 0x2f8   : > { %3463 = vrcp.f32 %v2052_v6  ;;  %v2059_v48 = vadd.f32 1.0, %v3452_v34 }
 0x2f9   : > { %3465 = vrcp.f32 %v2058_v0 }
 0x2fa   : > { %3467 = vrcp.f32 %v2059_v48 }
 0x2fd   : > { %v3454_v45 = vpop.eup %3453 }
 0x2fe   : > { %v3456_v22 = vpop.eup %3455  ;;  %2373 = vst [vmem:[%s3910_s20 + $0x2c0] sm:$0xff] %v3454_v45 }
 0x2ff   : > { %v3458_v8 = vpop.eup %3457  ;;  %2374 = vst [vmem:[%s3910_s20 + $0x2c8] sm:$0xff] %v3456_v22 }
 0x300   : > { %v3460_v58 = vpop.eup %3459  ;;  %2380 = vst [vmem:[%s3910_s20 + $0x2f8] sm:$0xff] %v3458_v8 }
 0x301   : > { %v3462_v30 = vpop.eup %3461  ;;  %2381 = vst [vmem:[%s3910_s20 + $0x300] sm:$0xff] %v3460_v58 }
 0x302   : > { %v3464_v10 = vpop.eup %3463  ;;  %2387 = vst [vmem:[%s3910_s20 + $0x330] sm:$0xff] %v3462_v30 }
 0x303   : > { %v3466_v32 = vpop.eup %3465  ;;  %2388 = vst [vmem:[%s3910_s20 + $0x338] sm:$0xff] %v3464_v10 }
 0x304   : > { %v3468_v55 = vpop.eup %3467  ;;  %2394 = vst [vmem:[%s3910_s20 + $0x368] sm:$0xff] %v3466_v32 }
 0x305   : > { %2395 = vst [vmem:[%s3910_s20 + $0x370] sm:$0xff] %v3468_v55 }
 0x306   : > { %3511 = shalt.err (!%p3508_p7)
}
 0x307   : > { %s3512_s18 = scalar_lea.hbm %s4388_s8, 14336  ;;  %s3516_s13 = scalar_lea.hbm %s4445_s7, 28672 }
 0x308   : > { %p3513_p8 = scmp.ne.s32.totalorder %s4388_s8, %s3512_s18  ;;  %p3517_p1 = scmp.lt.u32.totalorder %s4388_s8, %s4445_s7 }
 0x309   : > { %p3518_p0 = scmp.lt.u32.totalorder %s3516_s13, %s3512_s18  ;;  %p3520_p6 = scmp.lt.u32.totalorder %s3512_s18, %s4388_s8 }
 0x30a   : > { %p3514_p11 = pnand %p3513_p8, %p4460_p9 }
 0x30b   : > { %p3519_p5 = por %p3518_p0, %p3517_p1 }
 0x30c   : > { %p3515_p13 = pneg %p3514_p11 }
 0x30d   : > { %p3521_p10 = por %p3520_p6, %p3519_p5 }
 0x30f   : > { %p3522_p12 = pnand %p3521_p10, %p3515_p13 }
 0x311   : > { %3525 = shalt.err (!%p3522_p12)
}
 0x312   : > { %s3571_s29 = smov 896   ;;  %s3572_s19 = smov 56  }
 0x313   : > { %2866 = dma.vmem_to_hbm [thread:$0]  (%p4460_p9), %s4391_s23, 14336, %s4388_s8, %s4397_s28, %s3571_s29, %s3571_s29, %s3572_s19  }
 0x314 PF: > { %p2878_p2 = scmp.ge.s32.totalorder %s3564_s27, 2  ;;  %s2427_s21 = sand.u32 1, %s3552_s24  }
 0x315   : > { %p4461_p3 = scmp.ne.s32.totalorder %s4450_s12, 0  ;;  %s2428_s9 = scalar_lea.sflag [#allocation4], %s2427_s21 }
 0x317   : > { %p2873_p4 = pnand %p2878_p2, %p4461_p3 }
 0x319   : > { %3547 = dma.done.wait (!%p2873_p4), %s2428_s9, 14336  }
 0x31a   : > { %3549 = vsyncadd (!%p2873_p4), %s2428_s9, 4294952960  ;;  %p18_p7 = scmp.ge.s32.totalorder %s3638_s30, 4   ;;  %s4462_s24 = smov %s3556_s25 }
 0x31b   : > { %s4463_s25 = smov %s3560_s26  ;;  %s4464_s26 = smov %s3649_s10 }
 0x31c   : > { %s4465_s27 = smov %s3638_s30  ;;  %20 = sbr.rel (!%p18_p7) target bundleno = 4 (0x4), region = 91 }
 0x323   :  { %2433 = vsyncpa [#allocation3], 1 }
 0x324   :  { %2435 = vsyncpa [#allocation3 + $0x1], 1 }
 0x325   :  { %2436 = vsyncpa [#allocation4], 1 }
 0x326   :  { %2438 = vsyncpa [#allocation4 + $0x1], 1 }

</bundles_post_ra>
